<compile_context>
chip_gen: v7x
topology: tpu7x:2x2x1
jax: 0.10.0
libtpu: 0.0.40
codegen_flags: <defaults>
</compile_context>

<pallas_src>
import jax
import jax.numpy as jnp
import numpy as np
from jax.experimental import pallas as pl
from jax.experimental.pallas import tpu as pltpu

LANE = 128  # TPU lane width; all feature dims are padded to multiples of this


def _round_up(x, m):
    return (x + m - 1) // m * m


# --------------------------------------------------------------------------
# Pallas kernel
# --------------------------------------------------------------------------
def make_vae_kernel(depth, growth, latent_dim, d_buf, layer_offs):
    assert growth % LANE == 0 and d_buf % LANE == 0
    # mu and logvar must both live inside the first 128 lanes of the head output
    assert 2 * latent_dim <= LANE

    def dense_block_and_head(buf, w_ref, b_ref, wf_ref, bf_ref):
        # DenseBlock: h_i = relu([x, h_0..h_{i-1}] @ W_i + b_i); concat into buf.
        # One full-K MXU dot per layer (bf16 operands, f32 accumulation).
        for i in range(depth):
            k = LANE + i * growth          # live prefix width of buf (static)
            off = layer_offs[i]            # static row offset into the ragged slab
            acc = jnp.dot(buf[:, :k].astype(jnp.bfloat16),
                          w_ref[off:off + k, :],
                          preferred_element_type=jnp.float32) + b_ref[i]
            buf[:, LANE + i * growth: LANE + (i + 1) * growth] = jnp.maximum(acc, 0.0)
        # Head linear over the full concatenated buffer (single full-K dot).
        return (jnp.dot(buf[...].astype(jnp.bfloat16), wf_ref[...],
                        preferred_element_type=jnp.float32) + bf_ref[...])

    def kernel(x_ref, eps_ref,
               we_ref, be_ref, wfe_ref, bfe_ref,
               wd_ref, bd_ref, wfd_ref, bfd_ref,
               zparams_ref, xparams_ref, buf):
        bsz = buf.shape[0]
        # ---------------- encoder ----------------
        # No full-buffer clear: chunk 0 is written here (x is zero beyond its
        # live lanes already) and every growth chunk is written before it is read.
        buf[:, :LANE] = x_ref[...]
        zp = dense_block_and_head(buf, we_ref, be_ref, wfe_ref, bfe_ref)
        zparams_ref[...] = zp
        # -------- reparameterize: z = mu + eps * exp(0.5 * logvar)  (f32) --------
        col = jax.lax.broadcasted_iota(jnp.int32, (bsz, LANE), 1)
        in_lat = col < latent_dim
        z_mu = jnp.where(in_lat, zp, 0.0)
        # bring logvar lanes [latent_dim : 2*latent_dim] into lanes [0 : latent_dim]
        z_lv = jnp.where(in_lat, pltpu.roll(zp, shift=LANE - latent_dim, axis=1), 0.0)
        z = z_mu + eps_ref[...] * jnp.exp(0.5 * z_lv)   # eps is zero beyond latent_dim
        # ---------------- decoder ----------------
        buf[:, :LANE] = z
        xparams_ref[...] = dense_block_and_head(buf, wd_ref, bd_ref, wfd_ref, bfd_ref)

    return kernel


# --------------------------------------------------------------------------
# Wrapper (padding, BlockSpecs, pallas_call)
# --------------------------------------------------------------------------
def vae_forward_pallas(x, eps, enc_pk, dec_pk, latent_dim, growth, depth,
                       block_b=None):
    B = x.shape[0]
    d_buf = LANE + depth * growth
    assert 2 * latent_dim <= LANE

    # Batch tiling: up to 256 rows per tile (fills the 2x256 MXU on v6e/v7x),
    # "parallel" so v7x's two TensorCores can split the batch.
    if block_b is None:
        block_b = min(256, _round_up(B, 8))
    B_pad = _round_up(B, block_b)
    grid_b = B_pad // block_b

    x_pad = jnp.zeros((B_pad, LANE), jnp.float32).at[:B, :x.shape[1]].set(x)
    eps_pad = jnp.zeros((B_pad, LANE), jnp.float32).at[:B, :latent_dim].set(eps)

    we, be, wfe, bfe = enc_pk
    wd, bd, wfd, bfd = dec_pk
    layer_offs = tuple(int(sum(LANE + j * growth for j in range(i)))
                       for i in range(depth))

    kernel = make_vae_kernel(depth, growth, latent_dim, d_buf, layer_offs)

    def batch_spec(shape):
        n_rest = len(shape) - 1
        return pl.BlockSpec((block_b,) + tuple(shape[1:]),
                            lambda i, _n=n_rest: (i,) + (0,) * _n)

    def invariant_spec(shape):
        nd = len(shape)
        return pl.BlockSpec(tuple(shape), lambda i, _nd=nd: (0,) * _nd)

    # VMEM budget: double-buffered inputs/outputs + f32 scratch + margin,
    # capped at 48 MiB so the same code also fits v7x's 64 MiB physical VMEM.
    weight_bytes = sum(int(a.size) * a.dtype.itemsize
                       for a in (we, be, wfe, bfe, wd, bd, wfd, bfd))
    io_bytes = 4 * block_b * LANE * 4
    scratch_bytes = block_b * d_buf * 4
    vmem_limit = int(min(48 * 1024 * 1024,
                         max(2 * (weight_bytes + io_bytes) + scratch_bytes + (4 << 20),
                             32 * 1024 * 1024)))

    # TODO(synk): at module-default sizes (growth=1024, depth=6) the bf16 weight
    # slabs (~70 MB) exceed v7x's 64 MiB VMEM even ragged-packed; there the
    # weights must be streamed per layer (layer grid axis or pltpu.emit_pipeline
    # with single-buffered, grid-invariant weight specs) instead of being fully
    # VMEM-resident as done here for the toy configuration.
    grid_spec = pltpu.PrefetchScalarGridSpec(
        num_scalar_prefetch=0,
        grid=(grid_b,),
        in_specs=[
            batch_spec(x_pad.shape), batch_spec(eps_pad.shape),
            invariant_spec(we.shape), invariant_spec(be.shape),
            invariant_spec(wfe.shape), invariant_spec(bfe.shape),
            invariant_spec(wd.shape), invariant_spec(bd.shape),
            invariant_spec(wfd.shape), invariant_spec(bfd.shape),
        ],
        out_specs=(batch_spec((B_pad, LANE)), batch_spec((B_pad, LANE))),
        scratch_shapes=[pltpu.VMEM((block_b, d_buf), jnp.float32)],
    )

    z_out, x_out = pl.pallas_call(
        kernel,
        grid_spec=grid_spec,
        out_shape=(jax.ShapeDtypeStruct((B_pad, LANE), jnp.float32),
                   jax.ShapeDtypeStruct((B_pad, LANE), jnp.float32)),
        compiler_params=pltpu.CompilerParams(
            dimension_semantics=("parallel",),
            vmem_limit_bytes=vmem_limit),
    )(x_pad, eps_pad, we, be, wfe, bfe, wd, bd, wfd, bfd)

    z_mu = z_out[:B, :latent_dim]
    z_logvar = z_out[:B, latent_dim:2 * latent_dim]
    x_mu = x_out[:B, :2]
    x_logvar = x_out[:B, 2:4]
    return x_mu, x_logvar, z_mu, z_logvar


# --------------------------------------------------------------------------
# Deterministic parameter construction (weight-norm Linear layers)
# --------------------------------------------------------------------------
def init_wn_linear(key, in_dim, out_dim, scale=0.05):
    kv, kg, kb = jax.random.split(key, 3)
    v = scale * jax.random.normal(kv, (out_dim, in_dim), jnp.float32)
    g = 1.0 + 0.1 * jax.random.normal(kg, (out_dim,), jnp.float32)
    b = 0.1 * jax.random.normal(kb, (out_dim,), jnp.float32)
    # nn.utils.weight_norm (dim=0): W = g * v / ||v||_row
    w = (g / (jnp.linalg.norm(v, axis=1) + 1e-12))[:, None] * v
    return w.T.astype(jnp.float32), b.astype(jnp.float32)   # (in, out), (out,)


def init_dense_net(key, in_dim, growth, depth, out_dim):
    keys = jax.random.split(key, depth + 1)
    Ws, bs = [], []
    for i in range(depth):
        w, b = init_wn_linear(keys[i], in_dim + i * growth, growth)
        Ws.append(w)
        bs.append(b)
    wf, bf = init_wn_linear(keys[depth], in_dim + depth * growth, out_dim)
    return Ws, bs, wf, bf


def pack_for_kernel(Ws, bs, wf, bf, in_dim, growth, depth, out_dim):
    """Ragged-pack weights into one slab matching the kernel's buffer layout.

    Layer i keeps only its live (1 + i*growth/128) row-blocks — no zero padding
    to the full concatenation width — so no dead rows are ever DMA'd.  Weights
    are cast to bf16 (MXU operands); biases stay f32.
    """
    d_buf = LANE + depth * growth

    def place(w_src, rows):
        # destination rows ordered [x (padded to LANE) | h_0 | h_1 | ...]
        w_src = np.asarray(w_src, np.float32)
        full = np.zeros((rows, w_src.shape[1]), np.float32)
        full[:in_dim] = w_src[:in_dim]
        n_h = (rows - LANE) // growth
        for j in range(n_h):
            full[LANE + j * growth: LANE + (j + 1) * growth] = \
                w_src[in_dim + j * growth: in_dim + (j + 1) * growth]
        return full

    w_slab = np.concatenate(
        [place(Ws[i], LANE + i * growth) for i in range(depth)], axis=0)
    b_stack = np.stack([np.asarray(b, np.float32) for b in bs])[:, None, :]
    wf_full = np.zeros((d_buf, LANE), np.float32)
    wf_full[:, :out_dim] = place(wf, d_buf)
    bf_full = np.zeros((1, LANE), np.float32)
    bf_full[0, :out_dim] = np.asarray(bf, np.float32)
    return (jnp.asarray(w_slab, jnp.bfloat16),
            jnp.asarray(b_stack, jnp.float32),
            jnp.asarray(wf_full, jnp.bfloat16),
            jnp.asarray(bf_full, jnp.float32))


# --------------------------------------------------------------------------
# Pure-JAX reference (mirrors the PyTorch forward; optional bf16 MXU operands)
# --------------------------------------------------------------------------
def vae_forward_ref(x, eps, enc, dec, latent_dim, matmul_dtype=jnp.float32):
    def mm(a, w):
        return jnp.dot(a.astype(matmul_dtype), w.astype(matmul_dtype),
                       preferred_element_type=jnp.float32)

    def block(h, Ws, bs):
        for w, b in zip(Ws, bs):
            h = jnp.concatenate([h, jnp.maximum(mm(h, w) + b, 0.0)], axis=1)
        return h

    Ws, bs, wf, bf = enc
    h = block(x, Ws, bs)
    zp = mm(h, wf) + bf
    z_mu, z_lv = zp[:, :latent_dim], zp[:, latent_dim:2 * latent_dim]
    z = z_mu + eps * jnp.exp(0.5 * z_lv)
    Ws, bs, wf, bf = dec
    h = block(z, Ws, bs)
    xp = mm(h, wf) + bf
    return xp[:, :2], xp[:, 2:4], z_mu, z_lv


# --------------------------------------------------------------------------
if __name__ == "__main__":
    # Small-but-consistent hyperparameters (module defaults are growth=1024,
    # depth=6; the kernel is fully parametric in growth/depth).
    latent_dim, growth, depth = 2, 128, 3
    B = 8

    key = jax.random.PRNGKey(0)
    k_x, k_eps, k_enc, k_dec = jax.random.split(key, 4)
    x = jax.random.uniform(k_x, (B, 2), jnp.float32, minval=-1.0, maxval=1.0)
    # TODO(synk): torch.cuda.FloatTensor(...).normal_() is device RNG; we feed
    # deterministic Gaussian noise `eps` from the host instead.
    eps = jax.random.normal(k_eps, (B, latent_dim), jnp.float32)

    enc = init_dense_net(k_enc, 2, growth, depth, 2 * latent_dim)
    dec = init_dense_net(k_dec, latent_dim, growth, depth, 4)
    enc_pk = pack_for_kernel(*enc, in_dim=2, growth=growth, depth=depth,
                             out_dim=2 * latent_dim)
    dec_pk = pack_for_kernel(*dec, in_dim=latent_dim, growth=growth, depth=depth,
                             out_dim=4)

    outs = vae_forward_pallas(x, eps, enc_pk, dec_pk, latent_dim, growth, depth)
    outs = jax.block_until_ready(outs)

    # Tight check against a reference using the same bf16 MXU operands.
    refs_bf16 = vae_forward_ref(x, eps, enc, dec, latent_dim,
                                matmul_dtype=jnp.bfloat16)
    for o, r in zip(outs, refs_bf16):
        o, r = np.asarray(o), np.asarray(r)
        assert np.allclose(o, r, atol=1e-2, rtol=1e-2), (
            "mismatch vs bf16 reference, max abs err = "
            + str(np.max(np.abs(o - r))))

    # Loose sanity check against the exact-f32 reference (deviation comes only
    # from the deliberate bf16 cast of the MXU operands).
    refs_f32 = vae_forward_ref(x, eps, enc, dec, latent_dim,
                               matmul_dtype=jnp.float32)
    for o, r in zip(outs, refs_f32):
        o, r = np.asarray(o), np.asarray(r)
        assert np.allclose(o, r, atol=1e-1, rtol=1e-1), (
            "mismatch vs f32 reference, max abs err = "
            + str(np.max(np.abs(o - r))))

    print("KERNEL_OK")
</pallas_src>

<mosaic_0001>
module attributes {stable_mosaic.version = 11 : i64} {
  func.func @kernel(%arg0: i32, %arg1: memref<8x128xf32, #tpu.memory_space<vmem>>, %arg2: memref<8x128xf32, #tpu.memory_space<vmem>>, %arg3: memref<768x128xbf16, #tpu.memory_space<vmem>>, %arg4: memref<3x1x128xf32, #tpu.memory_space<vmem>>, %arg5: memref<512x128xbf16, #tpu.memory_space<vmem>>, %arg6: memref<1x128xf32, #tpu.memory_space<vmem>>, %arg7: memref<768x128xbf16, #tpu.memory_space<vmem>>, %arg8: memref<3x1x128xf32, #tpu.memory_space<vmem>>, %arg9: memref<512x128xbf16, #tpu.memory_space<vmem>>, %arg10: memref<1x128xf32, #tpu.memory_space<vmem>>, %arg11: memref<8x128xf32, #tpu.memory_space<vmem>>, %arg12: memref<8x128xf32, #tpu.memory_space<vmem>>, %arg13: memref<8x512xf32, #tpu.memory_space<vmem>>) attributes {dimension_semantics = [#tpu.dimension_semantics<parallel>], iteration_bounds = array<i64: 1>, scalar_prefetch = 0 : i64, scratch_operands = 1 : i64, tpu.core_type = #tpu.core_type<tc>, window_params = [{transform_indices = @transform_0, window_bounds = array<i64: 8, 128>}, {transform_indices = @transform_1, window_bounds = array<i64: 8, 128>}, {pipeline_mode = #tpu.pipeline_mode<synchronous>, transform_indices = @transform_2, window_bounds = array<i64: 768, 128>}, {pipeline_mode = #tpu.pipeline_mode<synchronous>, transform_indices = @transform_3, window_bounds = array<i64: 3, 1, 128>}, {pipeline_mode = #tpu.pipeline_mode<synchronous>, transform_indices = @transform_4, window_bounds = array<i64: 512, 128>}, {pipeline_mode = #tpu.pipeline_mode<synchronous>, transform_indices = @transform_5, window_bounds = array<i64: 1, 128>}, {pipeline_mode = #tpu.pipeline_mode<synchronous>, transform_indices = @transform_6, window_bounds = array<i64: 768, 128>}, {pipeline_mode = #tpu.pipeline_mode<synchronous>, transform_indices = @transform_7, window_bounds = array<i64: 3, 1, 128>}, {pipeline_mode = #tpu.pipeline_mode<synchronous>, transform_indices = @transform_8, window_bounds = array<i64: 512, 128>}, {pipeline_mode = #tpu.pipeline_mode<synchronous>, transform_indices = @transform_9, window_bounds = array<i64: 1, 128>}, {transform_indices = @transform_10, window_bounds = array<i64: 8, 128>}, {transform_indices = @transform_11, window_bounds = array<i64: 8, 128>}]} {
    %c0 = arith.constant 0 : index
    %c0_0 = arith.constant 0 : index
    %0 = vector.load %arg1[%c0, %c0_0] : memref<8x128xf32, #tpu.memory_space<vmem>>, vector<8x128xf32>
    %c0_1 = arith.constant 0 : index
    %c0_2 = arith.constant 0 : index
    %1 = vector.load %arg13[%c0_1, %c0_2] : memref<8x512xf32, #tpu.memory_space<vmem>>, vector<8x128xf32>
    tpu.vector_store %arg13[%c0_1, %c0_2], %0 {strides = array<i32>} : memref<8x512xf32, #tpu.memory_space<vmem>>, vector<8x128xf32>,
    %c0_3 = arith.constant 0 : index
    %c0_4 = arith.constant 0 : index
    %2 = vector.load %arg13[%c0_3, %c0_4] : memref<8x512xf32, #tpu.memory_space<vmem>>, vector<8x128xf32>
    %3 = arith.truncf %2 : vector<8x128xf32> to vector<8x128xbf16>
    %c0_5 = arith.constant 0 : index
    %c0_6 = arith.constant 0 : index
    %4 = vector.load %arg3[%c0_5, %c0_6] : memref<768x128xbf16, #tpu.memory_space<vmem>>, vector<128x128xbf16>
    %cst = arith.constant dense<0.000000e+00> : vector<8x128xf32>
    %5 = tpu.matmul %3, %4, %cst {dimension_numbers = #tpu.dot_dimension_numbers<[1], [0], [0], [1], [0, 0, 1, 1], [], []>} : vector<8x128xbf16>, vector<128x128xbf16>, vector<8x128xf32> -> vector<8x128xf32>
    %c0_7 = arith.constant 0 : index
    %c0_8 = arith.constant 0 : index
    %c0_9 = arith.constant 0 : index
    %6 = vector.load %arg4[%c0_7, %c0_8, %c0_9] : memref<3x1x128xf32, #tpu.memory_space<vmem>>, vector<1x1x128xf32>
    %7 = vector.shape_cast %6 : vector<1x1x128xf32> to vector<1x128xf32>
    %8 = vector.broadcast %7 : vector<1x128xf32> to vector<8x128xf32>
    %9 = arith.addf %5, %8 : vector<8x128xf32>
    %cst_10 = arith.constant 0.000000e+00 : f32
    %10 = vector.broadcast %cst_10 : f32 to vector<8x128xf32>
    %11 = arith.maximumf %9, %10 : vector<8x128xf32>
    %c0_11 = arith.constant 0 : index
    %c128 = arith.constant 128 : index
    %12 = vector.load %arg13[%c0_11, %c128] : memref<8x512xf32, #tpu.memory_space<vmem>>, vector<8x128xf32>
    tpu.vector_store %arg13[%c0_11, %c128], %11 {strides = array<i32>} : memref<8x512xf32, #tpu.memory_space<vmem>>, vector<8x128xf32>,
    %c0_12 = arith.constant 0 : index
    %c0_13 = arith.constant 0 : index
    %13 = vector.load %arg13[%c0_12, %c0_13] : memref<8x512xf32, #tpu.memory_space<vmem>>, vector<8x256xf32>
    %14 = arith.truncf %13 : vector<8x256xf32> to vector<8x256xbf16>
    %c128_14 = arith.constant 128 : index
    %c0_15 = arith.constant 0 : index
    %15 = vector.load %arg3[%c128_14, %c0_15] : memref<768x128xbf16, #tpu.memory_space<vmem>>, vector<256x128xbf16>
    %cst_16 = arith.constant dense<0.000000e+00> : vector<8x128xf32>
    %16 = tpu.matmul %14, %15, %cst_16 {dimension_numbers = #tpu.dot_dimension_numbers<[1], [0], [0], [1], [0, 0, 1, 1], [], []>} : vector<8x256xbf16>, vector<256x128xbf16>, vector<8x128xf32> -> vector<8x128xf32>
    %c1 = arith.constant 1 : index
    %c0_17 = arith.constant 0 : index
    %c0_18 = arith.constant 0 : index
    %17 = vector.load %arg4[%c1, %c0_17, %c0_18] : memref<3x1x128xf32, #tpu.memory_space<vmem>>, vector<1x1x128xf32>
    %18 = vector.shape_cast %17 : vector<1x1x128xf32> to vector<1x128xf32>
    %19 = vector.broadcast %18 : vector<1x128xf32> to vector<8x128xf32>
    %20 = arith.addf %16, %19 : vector<8x128xf32>
    %cst_19 = arith.constant 0.000000e+00 : f32
    %21 = vector.broadcast %cst_19 : f32 to vector<8x128xf32>
    %22 = arith.maximumf %20, %21 : vector<8x128xf32>
    %c0_20 = arith.constant 0 : index
    %c256 = arith.constant 256 : index
    %23 = vector.load %arg13[%c0_20, %c256] : memref<8x512xf32, #tpu.memory_space<vmem>>, vector<8x128xf32>
    tpu.vector_store %arg13[%c0_20, %c256], %22 {strides = array<i32>} : memref<8x512xf32, #tpu.memory_space<vmem>>, vector<8x128xf32>,
    %c0_21 = arith.constant 0 : index
    %c0_22 = arith.constant 0 : index
    %24 = vector.load %arg13[%c0_21, %c0_22] : memref<8x512xf32, #tpu.memory_space<vmem>>, vector<8x384xf32>
    %25 = arith.truncf %24 : vector<8x384xf32> to vector<8x384xbf16>
    %c384 = arith.constant 384 : index
    %c0_23 = arith.constant 0 : index
    %26 = vector.load %arg3[%c384, %c0_23] : memref<768x128xbf16, #tpu.memory_space<vmem>>, vector<384x128xbf16>
    %cst_24 = arith.constant dense<0.000000e+00> : vector<8x128xf32>
    %27 = tpu.matmul %25, %26, %cst_24 {dimension_numbers = #tpu.dot_dimension_numbers<[1], [0], [0], [1], [0, 0, 1, 1], [], []>} : vector<8x384xbf16>, vector<384x128xbf16>, vector<8x128xf32> -> vector<8x128xf32>
    %c2 = arith.constant 2 : index
    %c0_25 = arith.constant 0 : index
    %c0_26 = arith.constant 0 : index
    %28 = vector.load %arg4[%c2, %c0_25, %c0_26] : memref<3x1x128xf32, #tpu.memory_space<vmem>>, vector<1x1x128xf32>
    %29 = vector.shape_cast %28 : vector<1x1x128xf32> to vector<1x128xf32>
    %30 = vector.broadcast %29 : vector<1x128xf32> to vector<8x128xf32>
    %31 = arith.addf %27, %30 : vector<8x128xf32>
    %cst_27 = arith.constant 0.000000e+00 : f32
    %32 = vector.broadcast %cst_27 : f32 to vector<8x128xf32>
    %33 = arith.maximumf %31, %32 : vector<8x128xf32>
    %c0_28 = arith.constant 0 : index
    %c384_29 = arith.constant 384 : index
    %34 = vector.load %arg13[%c0_28, %c384_29] : memref<8x512xf32, #tpu.memory_space<vmem>>, vector<8x128xf32>
    tpu.vector_store %arg13[%c0_28, %c384_29], %33 {strides = array<i32>} : memref<8x512xf32, #tpu.memory_space<vmem>>, vector<8x128xf32>,
    %c0_30 = arith.constant 0 : index
    %c0_31 = arith.constant 0 : index
    %35 = vector.load %arg13[%c0_30, %c0_31] : memref<8x512xf32, #tpu.memory_space<vmem>>, vector<8x512xf32>
    %36 = arith.truncf %35 : vector<8x512xf32> to vector<8x512xbf16>
    %c0_32 = arith.constant 0 : index
    %c0_33 = arith.constant 0 : index
    %37 = vector.load %arg5[%c0_32, %c0_33] : memref<512x128xbf16, #tpu.memory_space<vmem>>, vector<512x128xbf16>
    %cst_34 = arith.constant dense<0.000000e+00> : vector<8x128xf32>
    %38 = tpu.matmul %36, %37, %cst_34 {dimension_numbers = #tpu.dot_dimension_numbers<[1], [0], [0], [1], [0, 0, 1, 1], [], []>} : vector<8x512xbf16>, vector<512x128xbf16>, vector<8x128xf32> -> vector<8x128xf32>
    %c0_35 = arith.constant 0 : index
    %c0_36 = arith.constant 0 : index
    %39 = vector.load %arg6[%c0_35, %c0_36] : memref<1x128xf32, #tpu.memory_space<vmem>>, vector<1x128xf32>
    %40 = vector.broadcast %39 : vector<1x128xf32> to vector<8x128xf32>
    %41 = arith.addf %38, %40 : vector<8x128xf32>
    %c0_37 = arith.constant 0 : index
    %c0_38 = arith.constant 0 : index
    %42 = vector.load %arg11[%c0_37, %c0_38] : memref<8x128xf32, #tpu.memory_space<vmem>>, vector<8x128xf32>
    tpu.vector_store %arg11[%c0_37, %c0_38], %41 {strides = array<i32>} : memref<8x128xf32, #tpu.memory_space<vmem>>, vector<8x128xf32>,
    %43 = tpu.iota {dimensions = array<i32: 1>} : vector<8x128xi32>
    %c2_i32 = arith.constant 2 : i32
    %44 = vector.broadcast %c2_i32 : i32 to vector<8x128xi32>
    %45 = arith.cmpi slt, %43, %44 : vector<8x128xi32>
    %cst_39 = arith.constant 0.000000e+00 : f32
    %46 = vector.broadcast %cst_39 : f32 to vector<8x128xf32>
    %47 = arith.select %45, %41, %46 : vector<8x128xi1>, vector<8x128xf32>
    %c126_i32 = arith.constant 126 : i32
    %48 = tpu.dynamic_rotate %41 by %c126_i32 dim 1 : vector<8x128xf32>, i32 -> vector<8x128xf32>
    %cst_40 = arith.constant 0.000000e+00 : f32
    %49 = vector.broadcast %cst_40 : f32 to vector<8x128xf32>
    %50 = arith.select %45, %48, %49 : vector<8x128xi1>, vector<8x128xf32>
    %c0_41 = arith.constant 0 : index
    %c0_42 = arith.constant 0 : index
    %51 = vector.load %arg2[%c0_41, %c0_42] : memref<8x128xf32, #tpu.memory_space<vmem>>, vector<8x128xf32>
    %cst_43 = arith.constant 5.000000e-01 : f32
    %52 = vector.broadcast %cst_43 : f32 to vector<8x128xf32>
    %53 = arith.mulf %52, %50 : vector<8x128xf32>
    %54 = math.exp %53 : vector<8x128xf32>
    %55 = arith.mulf %51, %54 : vector<8x128xf32>
    %56 = arith.addf %47, %55 : vector<8x128xf32>
    %c0_44 = arith.constant 0 : index
    %c0_45 = arith.constant 0 : index
    %57 = vector.load %arg13[%c0_44, %c0_45] : memref<8x512xf32, #tpu.memory_space<vmem>>, vector<8x128xf32>
    tpu.vector_store %arg13[%c0_44, %c0_45], %56 {strides = array<i32>} : memref<8x512xf32, #tpu.memory_space<vmem>>, vector<8x128xf32>,
    %c0_46 = arith.constant 0 : index
    %c0_47 = arith.constant 0 : index
    %58 = vector.load %arg13[%c0_46, %c0_47] : memref<8x512xf32, #tpu.memory_space<vmem>>, vector<8x128xf32>
    %59 = arith.truncf %58 : vector<8x128xf32> to vector<8x128xbf16>
    %c0_48 = arith.constant 0 : index
    %c0_49 = arith.constant 0 : index
    %60 = vector.load %arg7[%c0_48, %c0_49] : memref<768x128xbf16, #tpu.memory_space<vmem>>, vector<128x128xbf16>
    %cst_50 = arith.constant dense<0.000000e+00> : vector<8x128xf32>
    %61 = tpu.matmul %59, %60, %cst_50 {dimension_numbers = #tpu.dot_dimension_numbers<[1], [0], [0], [1], [0, 0, 1, 1], [], []>} : vector<8x128xbf16>, vector<128x128xbf16>, vector<8x128xf32> -> vector<8x128xf32>
    %c0_51 = arith.constant 0 : index
    %c0_52 = arith.constant 0 : index
    %c0_53 = arith.constant 0 : index
    %62 = vector.load %arg8[%c0_51, %c0_52, %c0_53] : memref<3x1x128xf32, #tpu.memory_space<vmem>>, vector<1x1x128xf32>
    %63 = vector.shape_cast %62 : vector<1x1x128xf32> to vector<1x128xf32>
    %64 = vector.broadcast %63 : vector<1x128xf32> to vector<8x128xf32>
    %65 = arith.addf %61, %64 : vector<8x128xf32>
    %cst_54 = arith.constant 0.000000e+00 : f32
    %66 = vector.broadcast %cst_54 : f32 to vector<8x128xf32>
    %67 = arith.maximumf %65, %66 : vector<8x128xf32>
    %c0_55 = arith.constant 0 : index
    %c128_56 = arith.constant 128 : index
    %68 = vector.load %arg13[%c0_55, %c128_56] : memref<8x512xf32, #tpu.memory_space<vmem>>, vector<8x128xf32>
    tpu.vector_store %arg13[%c0_55, %c128_56], %67 {strides = array<i32>} : memref<8x512xf32, #tpu.memory_space<vmem>>, vector<8x128xf32>,
    %c0_57 = arith.constant 0 : index
    %c0_58 = arith.constant 0 : index
    %69 = vector.load %arg13[%c0_57, %c0_58] : memref<8x512xf32, #tpu.memory_space<vmem>>, vector<8x256xf32>
    %70 = arith.truncf %69 : vector<8x256xf32> to vector<8x256xbf16>
    %c128_59 = arith.constant 128 : index
    %c0_60 = arith.constant 0 : index
    %71 = vector.load %arg7[%c128_59, %c0_60] : memref<768x128xbf16, #tpu.memory_space<vmem>>, vector<256x128xbf16>
    %cst_61 = arith.constant dense<0.000000e+00> : vector<8x128xf32>
    %72 = tpu.matmul %70, %71, %cst_61 {dimension_numbers = #tpu.dot_dimension_numbers<[1], [0], [0], [1], [0, 0, 1, 1], [], []>} : vector<8x256xbf16>, vector<256x128xbf16>, vector<8x128xf32> -> vector<8x128xf32>
    %c1_62 = arith.constant 1 : index
    %c0_63 = arith.constant 0 : index
    %c0_64 = arith.constant 0 : index
    %73 = vector.load %arg8[%c1_62, %c0_63, %c0_64] : memref<3x1x128xf32, #tpu.memory_space<vmem>>, vector<1x1x128xf32>
    %74 = vector.shape_cast %73 : vector<1x1x128xf32> to vector<1x128xf32>
    %75 = vector.broadcast %74 : vector<1x128xf32> to vector<8x128xf32>
    %76 = arith.addf %72, %75 : vector<8x128xf32>
    %cst_65 = arith.constant 0.000000e+00 : f32
    %77 = vector.broadcast %cst_65 : f32 to vector<8x128xf32>
    %78 = arith.maximumf %76, %77 : vector<8x128xf32>
    %c0_66 = arith.constant 0 : index
    %c256_67 = arith.constant 256 : index
    %79 = vector.load %arg13[%c0_66, %c256_67] : memref<8x512xf32, #tpu.memory_space<vmem>>, vector<8x128xf32>
    tpu.vector_store %arg13[%c0_66, %c256_67], %78 {strides = array<i32>} : memref<8x512xf32, #tpu.memory_space<vmem>>, vector<8x128xf32>,
    %c0_68 = arith.constant 0 : index
    %c0_69 = arith.constant 0 : index
    %80 = vector.load %arg13[%c0_68, %c0_69] : memref<8x512xf32, #tpu.memory_space<vmem>>, vector<8x384xf32>
    %81 = arith.truncf %80 : vector<8x384xf32> to vector<8x384xbf16>
    %c384_70 = arith.constant 384 : index
    %c0_71 = arith.constant 0 : index
    %82 = vector.load %arg7[%c384_70, %c0_71] : memref<768x128xbf16, #tpu.memory_space<vmem>>, vector<384x128xbf16>
    %cst_72 = arith.constant dense<0.000000e+00> : vector<8x128xf32>
    %83 = tpu.matmul %81, %82, %cst_72 {dimension_numbers = #tpu.dot_dimension_numbers<[1], [0], [0], [1], [0, 0, 1, 1], [], []>} : vector<8x384xbf16>, vector<384x128xbf16>, vector<8x128xf32> -> vector<8x128xf32>
    %c2_73 = arith.constant 2 : index
    %c0_74 = arith.constant 0 : index
    %c0_75 = arith.constant 0 : index
    %84 = vector.load %arg8[%c2_73, %c0_74, %c0_75] : memref<3x1x128xf32, #tpu.memory_space<vmem>>, vector<1x1x128xf32>
    %85 = vector.shape_cast %84 : vector<1x1x128xf32> to vector<1x128xf32>
    %86 = vector.broadcast %85 : vector<1x128xf32> to vector<8x128xf32>
    %87 = arith.addf %83, %86 : vector<8x128xf32>
    %cst_76 = arith.constant 0.000000e+00 : f32
    %88 = vector.broadcast %cst_76 : f32 to vector<8x128xf32>
    %89 = arith.maximumf %87, %88 : vector<8x128xf32>
    %c0_77 = arith.constant 0 : index
    %c384_78 = arith.constant 384 : index
    %90 = vector.load %arg13[%c0_77, %c384_78] : memref<8x512xf32, #tpu.memory_space<vmem>>, vector<8x128xf32>
    tpu.vector_store %arg13[%c0_77, %c384_78], %89 {strides = array<i32>} : memref<8x512xf32, #tpu.memory_space<vmem>>, vector<8x128xf32>,
    %c0_79 = arith.constant 0 : index
    %c0_80 = arith.constant 0 : index
    %91 = vector.load %arg13[%c0_79, %c0_80] : memref<8x512xf32, #tpu.memory_space<vmem>>, vector<8x512xf32>
    %92 = arith.truncf %91 : vector<8x512xf32> to vector<8x512xbf16>
    %c0_81 = arith.constant 0 : index
    %c0_82 = arith.constant 0 : index
    %93 = vector.load %arg9[%c0_81, %c0_82] : memref<512x128xbf16, #tpu.memory_space<vmem>>, vector<512x128xbf16>
    %cst_83 = arith.constant dense<0.000000e+00> : vector<8x128xf32>
    %94 = tpu.matmul %92, %93, %cst_83 {dimension_numbers = #tpu.dot_dimension_numbers<[1], [0], [0], [1], [0, 0, 1, 1], [], []>} : vector<8x512xbf16>, vector<512x128xbf16>, vector<8x128xf32> -> vector<8x128xf32>
    %c0_84 = arith.constant 0 : index
    %c0_85 = arith.constant 0 : index
    %95 = vector.load %arg10[%c0_84, %c0_85] : memref<1x128xf32, #tpu.memory_space<vmem>>, vector<1x128xf32>
    %96 = vector.broadcast %95 : vector<1x128xf32> to vector<8x128xf32>
    %97 = arith.addf %94, %96 : vector<8x128xf32>
    %c0_86 = arith.constant 0 : index
    %c0_87 = arith.constant 0 : index
    %98 = vector.load %arg12[%c0_86, %c0_87] : memref<8x128xf32, #tpu.memory_space<vmem>>, vector<8x128xf32>
    tpu.vector_store %arg12[%c0_86, %c0_87], %97 {strides = array<i32>} : memref<8x128xf32, #tpu.memory_space<vmem>>, vector<8x128xf32>,
    return
  }
  func.func @transform_0(%arg0: i32) -> (i32, i32) {
    %c0_i32 = arith.constant 0 : i32
    %c0_i32_0 = arith.constant 0 : i32
    return %arg0, %c0_i32 : i32, i32
  }
  func.func @transform_1(%arg0: i32) -> (i32, i32) {
    %c0_i32 = arith.constant 0 : i32
    %c0_i32_0 = arith.constant 0 : i32
    return %arg0, %c0_i32 : i32, i32
  }
  func.func @transform_2(%arg0: i32) -> (i32, i32) {
    %c0_i32 = arith.constant 0 : i32
    %c0_i32_0 = arith.constant 0 : i32
    %c0_i32_1 = arith.constant 0 : i32
    return %c0_i32, %c0_i32_0 : i32, i32
  }
  func.func @transform_3(%arg0: i32) -> (i32, i32, i32) {
    %c0_i32 = arith.constant 0 : i32
    %c0_i32_0 = arith.constant 0 : i32
    %c0_i32_1 = arith.constant 0 : i32
    %c0_i32_2 = arith.constant 0 : i32
    return %c0_i32, %c0_i32_0, %c0_i32_1 : i32, i32, i32
  }
  func.func @transform_4(%arg0: i32) -> (i32, i32) {
    %c0_i32 = arith.constant 0 : i32
    %c0_i32_0 = arith.constant 0 : i32
    %c0_i32_1 = arith.constant 0 : i32
    return %c0_i32, %c0_i32_0 : i32, i32
  }
  func.func @transform_5(%arg0: i32) -> (i32, i32) {
    %c0_i32 = arith.constant 0 : i32
    %c0_i32_0 = arith.constant 0 : i32
    %c0_i32_1 = arith.constant 0 : i32
    return %c0_i32, %c0_i32_0 : i32, i32
  }
  func.func @transform_6(%arg0: i32) -> (i32, i32) {
    %c0_i32 = arith.constant 0 : i32
    %c0_i32_0 = arith.constant 0 : i32
    %c0_i32_1 = arith.constant 0 : i32
    return %c0_i32, %c0_i32_0 : i32, i32
  }
  func.func @transform_7(%arg0: i32) -> (i32, i32, i32) {
    %c0_i32 = arith.constant 0 : i32
    %c0_i32_0 = arith.constant 0 : i32
    %c0_i32_1 = arith.constant 0 : i32
    %c0_i32_2 = arith.constant 0 : i32
    return %c0_i32, %c0_i32_0, %c0_i32_1 : i32, i32, i32
  }
  func.func @transform_8(%arg0: i32) -> (i32, i32) {
    %c0_i32 = arith.constant 0 : i32
    %c0_i32_0 = arith.constant 0 : i32
    %c0_i32_1 = arith.constant 0 : i32
    return %c0_i32, %c0_i32_0 : i32, i32
  }
  func.func @transform_9(%arg0: i32) -> (i32, i32) {
    %c0_i32 = arith.constant 0 : i32
    %c0_i32_0 = arith.constant 0 : i32
    %c0_i32_1 = arith.constant 0 : i32
    return %c0_i32, %c0_i32_0 : i32, i32
  }
  func.func @transform_10(%arg0: i32) -> (i32, i32) {
    %c0_i32 = arith.constant 0 : i32
    %c0_i32_0 = arith.constant 0 : i32
    return %arg0, %c0_i32 : i32, i32
  }
  func.func @transform_11(%arg0: i32) -> (i32, i32) {
    %c0_i32 = arith.constant 0 : i32
    %c0_i32_0 = arith.constant 0 : i32
    return %arg0, %c0_i32 : i32, i32
  }
}

</mosaic_0001>

<bundles_post_ra>
// kernel: tpu_custom_call.1
= control target key start
LH: loop header
LB: loop body
LE: loop exit
PB: predicated region body
PF: predicated region fallthrough
CT: control target
= control target key end

     0   :  { %17 = vsyncpa [#allocation4], 0  ;;  %s3124_s0 = inlined_call_operand.hbm [shape: f32[8,128], index: 0, kind: input, shape index: {}]   ;;  %s3125_s1 = inlined_call_operand.hbm [shape: f32[8,128], index: 1, kind: input, shape index: {}]   ;;  %s3126_s2 = inlined_call_operand.hbm [shape: bf16[768,128], index: 2, kind: input, shape index: {}]   ;;  %s3127_s3 = inlined_call_operand.vmem [shape: f32[3,1,128], index: 3, kind: input, shape index: {}]   ;;  %s3128_s4 = inlined_call_operand.hbm [shape: bf16[512,128], index: 4, kind: input, shape index: {}]   ;;  %s3129_s5 = inlined_call_operand.vmem [shape: f32[1,128], index: 5, kind: input, shape index: {}]   ;;  %s3130_s6 = inlined_call_operand.hbm [shape: bf16[768,128], index: 6, kind: input, shape index: {}]   ;;  %s3131_s7 = inlined_call_operand.vmem [shape: f32[3,1,128], index: 7, kind: input, shape index: {}]   ;;  %s3132_s8 = inlined_call_operand.hbm [shape: bf16[512,128], index: 8, kind: input, shape index: {}]   ;;  %s3133_s9 = inlined_call_operand.vmem [shape: f32[1,128], index: 9, kind: input, shape index: {}]   ;;  %s3134_s10 = inlined_call_operand.hbm [shape: f32[8,128], index: 10, kind: output, shape index: {0}]   ;;  %s3135_s11 = inlined_call_operand.hbm [shape: f32[8,128], index: 11, kind: output, shape index: {1}]  }
   0x1   :  { %18 = vsyncpa [#allocation7], 0 }
   0x2   :  { %19 = vsyncpa [#allocation10], 0 }
   0x3   :  { %20 = vsyncpa [#allocation13], 0 }
   0x4   :  { %21 = vsyncpa [#allocation5], 0 }
   0x5   :  { %22 = vsyncpa [#allocation16], 0  ;;  %s2867_s17 = smov [#allocation6]   ;;  %s2679_s21 = scalar_lea.hbm %s3125_s1, 128 }
   0x6   :  { %s39_s18 = sshll.u32 %s2867_s17, 4  ;;  %p2680_p0 = scmp.ne.s32.totalorder %s3125_s1, %s2679_s21  ;;  %s40_s18 = int_to_ptr.vmem [resolvable:$true] %s39_s18 }
   0x7   :  { %p2683_p1 = scmp.lt.u32.totalorder %s2679_s21, %s3125_s1 }
   0x9   :  { %p2685_p2 = pnand %p2683_p1, %p2680_p0 }
   0xb   :  { %2688 = shalt.err (!%p2685_p2)
}
   0xc   :  { %s2689_s26 = scalar_lea.vmem %s40_s18, 128  ;;  %p2694_p4 = scmp.lt.s32.totalorder %s40_s18, %s40_s18 }
   0xd   :  { %p2690_p3 = scmp.ne.s32.totalorder %s40_s18, %s2689_s26  ;;  %p2695_p5 = scmp.lt.s32.totalorder %s2689_s26, %s2689_s26 }
   0xf   :  { %p2696_p6 = por %p2695_p5, %p2694_p4 }
  0x11   :  { %p2697_p7 = pnand %p2696_p6, %p2690_p3 }
  0x13   :  { %2700 = shalt.err (!%p2697_p7)
}
  0x14   :  { %42 = dma.hbm_to_vmem [thread:$0]  %s3125_s1, 128, %s40_s18, [#allocation7]  }
  0x15   :  { %s2868_s29 = smov [#allocation9]   ;;  %s2869_s12 = smov [#allocation3]  }
  0x16   :  { %s62_s30 = sshll.u32 %s2868_s29, 4  ;;  %s29_s13 = sshll.u32 %s2869_s12, 4  ;;  %s63_s30 = int_to_ptr.vmem [resolvable:$true] %s62_s30  ;;  %s30_s13 = int_to_ptr.vmem [resolvable:$true] %s29_s13 }
  0x17   :  { %s2701_s16 = scalar_lea.hbm %s3128_s4, 4096 }
  0x18   :  { %p2702_p8 = scmp.ne.s32.totalorder %s3128_s4, %s2701_s16  ;;  %p2705_p9 = scmp.lt.u32.totalorder %s2701_s16, %s3128_s4 }
  0x1a   :  { %p2707_p10 = pnand %p2705_p9, %p2702_p8 }
  0x1c   :  { %2710 = shalt.err (!%p2707_p10)
}
  0x1d   :  { %s2711_s1 = scalar_lea.vmem %s63_s30, 4096  ;;  %p2716_p12 = scmp.lt.s32.totalorder %s63_s30, %s63_s30 }
  0x1e   :  { %p2712_p11 = scmp.ne.s32.totalorder %s63_s30, %s2711_s1  ;;  %p2717_p13 = scmp.lt.s32.totalorder %s2711_s1, %s2711_s1 }
  0x20   :  { %p2718_p0 = por %p2717_p13, %p2716_p12 }
  0x22   :  { %p2719_p1 = pnand %p2718_p0, %p2712_p11 }
  0x24   :  { %2722 = shalt.err (!%p2719_p1)
}
  0x25   :  { %s2870_s18 = smov 64   ;;  %s2871_s22 = smov 4  }
  0x26   :  { %68 = dma.hbm_to_vmem [thread:$0]  %s3128_s4, 4096, %s63_s30, [#allocation10], %s2870_s18, %s2870_s18, %s2871_s22  }
  0x27   :  { %s2723_s27 = scalar_lea.hbm %s3124_s0, 128 }
  0x28   :  { %p2724_p2 = scmp.ne.s32.totalorder %s3124_s0, %s2723_s27  ;;  %p2727_p3 = scmp.lt.u32.totalorder %s2723_s27, %s3124_s0 }
  0x2a   :  { %p2729_p4 = pnand %p2727_p3, %p2724_p2 }
  0x2c   :  { %2732 = shalt.err (!%p2729_p4)
}
  0x2d   :  { %s2733_s15 = scalar_lea.vmem %s30_s13, 128  ;;  %p2738_p6 = scmp.lt.s32.totalorder %s30_s13, %s30_s13 }
  0x2e   :  { %p2734_p5 = scmp.ne.s32.totalorder %s30_s13, %s2733_s15  ;;  %p2739_p7 = scmp.lt.s32.totalorder %s2733_s15, %s2733_s15 }
  0x30   :  { %p2740_p8 = por %p2739_p7, %p2738_p6 }
  0x32   :  { %p2741_p9 = pnand %p2740_p8, %p2734_p5 }
  0x34   :  { %2744 = shalt.err (!%p2741_p9)
}
  0x35   :  { %32 = dma.hbm_to_vmem [thread:$0]  %s3124_s0, 128, %s30_s13, [#allocation4]  }
  0x36   :  { %s2872_s16 = smov [#allocation8]   ;;  %s2873_s19 = smov [#allocation11]  }
  0x37   :  { %s48_s17 = sshll.u32 %s2872_s16, 4  ;;  %s76_s20 = sshll.u32 %s2873_s19, 4  ;;  %s49_s17 = int_to_ptr.vmem [resolvable:$true] %s48_s17  ;;  %s77_s20 = int_to_ptr.vmem [resolvable:$true] %s76_s20 }
  0x38   :  { %s2745_s23 = scalar_lea.hbm %s3126_s2, 6144 }
  0x39   :  { %p2746_p10 = scmp.ne.s32.totalorder %s3126_s2, %s2745_s23  ;;  %p2749_p11 = scmp.lt.u32.totalorder %s2745_s23, %s3126_s2 }
  0x3b   :  { %p2751_p12 = pnand %p2749_p11, %p2746_p10 }
  0x3d   :  { %2754 = shalt.err (!%p2751_p12)
}
  0x3e   :  { %s2755_s0 = scalar_lea.vmem %s49_s17, 6144  ;;  %p2760_p0 = scmp.lt.s32.totalorder %s49_s17, %s49_s17 }
  0x3f   :  { %p2756_p13 = scmp.ne.s32.totalorder %s49_s17, %s2755_s0  ;;  %p2761_p1 = scmp.lt.s32.totalorder %s2755_s0, %s2755_s0 }
  0x41   :  { %p2762_p2 = por %p2761_p1, %p2760_p0 }
  0x43   :  { %p2763_p3 = pnand %p2762_p2, %p2756_p13 }
  0x45   :  { %2766 = shalt.err (!%p2763_p3)
}
  0x46   :  { %54 = dma.hbm_to_vmem [thread:$0]  %s3126_s2, 6144, %s49_s17, [#allocation7], %s2870_s18, %s2870_s18, %s2871_s22  }
  0x47   :  { %s2767_s14 = scalar_lea.hbm %s3130_s6, 6144 }
  0x48   :  { %p2768_p4 = scmp.ne.s32.totalorder %s3130_s6, %s2767_s14  ;;  %p2771_p5 = scmp.lt.u32.totalorder %s2767_s14, %s3130_s6 }
  0x4a   :  { %p2773_p6 = pnand %p2771_p5, %p2768_p4 }
  0x4c   :  { %2776 = shalt.err (!%p2773_p6)
}
  0x4d   :  { %s2777_s19 = scalar_lea.vmem %s77_s20, 6144  ;;  %p2782_p8 = scmp.lt.s32.totalorder %s77_s20, %s77_s20 }
  0x4e   :  { %p2778_p7 = scmp.ne.s32.totalorder %s77_s20, %s2777_s19  ;;  %p2783_p9 = scmp.lt.s32.totalorder %s2777_s19, %s2777_s19 }
  0x50   :  { %p2784_p10 = por %p2783_p9, %p2782_p8 }
  0x52   :  { %p2785_p11 = pnand %p2784_p10, %p2778_p7 }
  0x54   :  { %2788 = shalt.err (!%p2785_p11)
}
  0x55   :  { %82 = dma.hbm_to_vmem [thread:$0]  %s3130_s6, 6144, %s77_s20, [#allocation10], %s2870_s18, %s2870_s18, %s2871_s22  }
  0x56   :  { %s2874_s21 = smov [#allocation12]   ;;  %s2789_s25 = scalar_lea.hbm %s3132_s8, 4096 }
  0x57   :  { %s90_s1 = sshll.u32 %s2874_s21, 4  ;;  %p2790_p12 = scmp.ne.s32.totalorder %s3132_s8, %s2789_s25  ;;  %s91_s1 = int_to_ptr.vmem [resolvable:$true] %s90_s1 }
  0x58   :  { %p2793_p13 = scmp.lt.u32.totalorder %s2789_s25, %s3132_s8 }
  0x5a   :  { %p2795_p0 = pnand %p2793_p13, %p2790_p12 }
  0x5c   :  { %2798 = shalt.err (!%p2795_p0)
}
  0x5d   :  { %s2799_s28 = scalar_lea.vmem %s91_s1, 4096  ;;  %p2804_p2 = scmp.lt.s32.totalorder %s91_s1, %s91_s1 }
  0x5e   :  { %p2800_p1 = scmp.ne.s32.totalorder %s91_s1, %s2799_s28  ;;  %p2805_p3 = scmp.lt.s32.totalorder %s2799_s28, %s2799_s28 }
  0x60   :  { %p2806_p4 = por %p2805_p3, %p2804_p2 }
  0x62   :  { %p2807_p5 = pnand %p2806_p4, %p2800_p1 }
  0x64   :  { %2810 = shalt.err (!%p2807_p5)
}
  0x65   :  { %96 = dma.hbm_to_vmem [thread:$0]  %s3132_s8, 4096, %s91_s1, [#allocation13], %s2870_s18, %s2870_s18, %s2871_s22  }
  0x66   :  { %2855 = dma.done.wait [#allocation4], 128  }
  0x67   :  { %2856 = vsyncadd [#allocation4], 4294967168 }
  0x68   :  { %2857 = dma.done.wait [#allocation7], 6272  }
  0x69   :  { %2858 = vsyncadd [#allocation7], 4294961024 }
  0x6a   :  { %2859 = dma.done.wait [#allocation10], 10240  }
  0x6b   :  { %2860 = vsyncadd [#allocation10], 4294957056 }
  0x6c   :  { %2861 = dma.done.wait [#allocation13], 4096  }
  0x6d   :  { %2862 = vsyncadd [#allocation13], 4294963200  ;;  %v2875_v0 = vmov 0.0   ;;  %vm2876_vm0 = vmmov 0   ;;  %v2517_v1 = vld [vmem:[#allocation8] sm:$0xff]   ;;  %v2518_v2 = vld [vmem:[#allocation8 + $0x8] sm:$0xff]  }
  0x6e   :  { %2424 = vmatprep.subr.bf16.mxu0 %v2875_v0  ;;  %2440 = vmatprep.mubr.msk.bf16.mxu0 %vm2876_vm0, %v2875_v0  ;;  %v2519_v3 = vld [vmem:[#allocation8 + $0x10] sm:$0xff]   ;;  %v2525_v4 = vld [vmem:[#allocation8 + $0x80] sm:$0xff]   ;;  %v2520_v5 = vld [vmem:[#allocation8 + $0x18] sm:$0xff]   ;;  %s2877_s4 = smov 126   ;;  %s2878_s21 = smov [#allocation14]  }
  0x6f   :  { %2425 = vmatpush3.bf16.msra.mxu0 %v2517_v1  ;;  %2221 = vmatprep.subr.bf16.mxu1 %v2525_v4  ;;  %v2527_v6 = vld [vmem:[#allocation8 + $0x40] sm:$0xff]   ;;  %v2529_v7 = vld [vmem:[#allocation8 + $0x88] sm:$0xff]   ;;  %v2533_v10 = vld [vmem:[#allocation8 + $0x90] sm:$0xff]   ;;  %s2014_s1 = sshll.u32 %s2878_s21, 4  ;;  %s2015_s1 = int_to_ptr.vmem [resolvable:$true] %s2014_s1 }
  0x70   :  { %2426 = vmatprep.subr.bf16.mxu0 %v2875_v0  ;;  %2222 = vmatpush3.bf16.msra.mxu1 %v2527_v6  ;;  %v2521_v8 = vld [vmem:[#allocation8 + $0x20] sm:$0xff]   ;;  %v2531_v9 = vld [vmem:[#allocation8 + $0x48] sm:$0xff]   ;;  %v2535_v12 = vld [vmem:[#allocation8 + $0x50] sm:$0xff]   ;;  %s2811_s23 = scalar_lea.vmem %s2015_s1, 128  ;;  %p2816_p7 = scmp.lt.s32.totalorder %s2015_s1, %s2015_s1 }
  0x71   :  { %2223 = vmatprep.subr.bf16.mxu1 %v2529_v7  ;;  %v2522_v11 = vld [vmem:[#allocation8 + $0x28] sm:$0xff]   ;;  %v2537_v13 = vld [vmem:[#allocation8 + $0x98] sm:$0xff]   ;;  %v2523_v14 = vld [vmem:[#allocation8 + $0x30] sm:$0xff]   ;;  %p2812_p6 = scmp.ne.s32.totalorder %s2015_s1, %s2811_s23  ;;  %p2817_p8 = scmp.lt.s32.totalorder %s2811_s23, %s2811_s23 }
  0x72   :  { %v2539_v15 = vld [vmem:[#allocation8 + $0x58] sm:$0xff]   ;;  %v118_v17 = vld [vmem:[#allocation3] sm:$0xff]  ;;  %v2541_v18 = vld [vmem:[#allocation8 + $0xa0] sm:$0xff]  }
  0x73   :  { %2427 = vmatpush3.bf16.msra.mxu0 %v2518_v2  ;;  %v2524_v16 = vld [vmem:[#allocation8 + $0x38] sm:$0xff]   ;;  %v2526_v19 = vld [vmem:[#allocation8 + $0x100] sm:$0xff]   ;;  %v3034_v22 = vpack.c.bf16 %v118_v17, %v118_v17  ;;  %v2545_v23 = vld [vmem:[#allocation8 + $0xa8] sm:$0xff]   ;;  %p2818_p9 = por %p2817_p8, %p2816_p7 }
  0x74   :  { %2428 = vmatprep.subr.bf16.mxu0 %v2875_v0  ;;  %2224 = vmatpush3.bf16.msra.mxu1 %v2531_v9  ;;  %v2543_v20 = vld [vmem:[#allocation8 + $0x60] sm:$0xff]   ;;  %v2530_v24 = vld [vmem:[#allocation8 + $0x108] sm:$0xff]   ;;  %v2534_v27 = vld [vmem:[#allocation8 + $0x110] sm:$0xff]  }
  0x75   :  { %2225 = vmatprep.subr.bf16.mxu1 %v2533_v10  ;;  %v2528_v21 = vld [vmem:[#allocation8 + $0xc0] sm:$0xff]   ;;  %v2547_v25 = vld [vmem:[#allocation8 + $0x68] sm:$0xff]   ;;  %v2536_v28 = vld [vmem:[#allocation8 + $0xd0] sm:$0xff]   ;;  %p2819_p10 = pnand %p2818_p9, %p2812_p6 }
  0x76   :  { %v2532_v26 = vld [vmem:[#allocation8 + $0xc8] sm:$0xff]   ;;  %v2538_v29 = vld [vmem:[#allocation8 + $0x118] sm:$0xff]   ;;  %v2542_v31 = vld [vmem:[#allocation8 + $0x120] sm:$0xff]  }
  0x77   :  { %2429 = vmatpush3.bf16.msra.mxu0 %v2519_v3  ;;  %v2540_v30 = vld [vmem:[#allocation8 + $0xd8] sm:$0xff]   ;;  %v2544_v32 = vld [vmem:[#allocation8 + $0xe0] sm:$0xff]   ;;  %v2546_v33 = vld [vmem:[#allocation8 + $0x128] sm:$0xff]  }
  0x78   :  { %2430 = vmatprep.subr.bf16.mxu0 %v2875_v0  ;;  %2226 = vmatpush3.bf16.msra.mxu1 %v2535_v12  ;;  %v2548_v34 = vld [vmem:[#allocation8 + $0xe8] sm:$0xff]   ;;  %v2549_v35 = vld [vmem:[#allocation8 + $0xb0] sm:$0xff]   ;;  %v2553_v39 = vld [vmem:[#allocation8 + $0xb8] sm:$0xff]  }
  0x79   :  { %2227 = vmatprep.subr.bf16.mxu1 %v2537_v13  ;;  %v2550_v36 = vld [vmem:[#allocation8 + $0x130] sm:$0xff]   ;;  %v2554_v40 = vld [vmem:[#allocation8 + $0x138] sm:$0xff]   ;;  %v2557_v51 = vld [vmem:[#allocation8 + $0x140] sm:$0xff]  }
  0x7a   :  { %v2551_v37 = vld [vmem:[#allocation8 + $0x70] sm:$0xff]   ;;  %v2555_v41 = vld [vmem:[#allocation8 + $0x78] sm:$0xff]   ;;  %v2558_v52 = vld [vmem:[#allocation8 + $0x148] sm:$0xff]  }
  0x7b   :  { %2431 = vmatpush3.bf16.msra.mxu0 %v2520_v5  ;;  %v2552_v38 = vld [vmem:[#allocation8 + $0xf0] sm:$0xff]   ;;  %v2556_v42 = vld [vmem:[#allocation8 + $0xf8] sm:$0xff]   ;;  %v2561_v55 = vld [vmem:[#allocation8 + $0x160] sm:$0xff]  }
  0x7c   :  { %2432 = vmatprep.subr.bf16.mxu0 %v2875_v0  ;;  %2228 = vmatpush3.bf16.msra.mxu1 %v2539_v15  ;;  %v2040_v43 = vld [vmem:[%s3127_s3] ss:$0 sm:$0xff]  ;;  %v2560_v54 = vld [vmem:[#allocation8 + $0x158] sm:$0xff]   ;;  %v2562_v56 = vld [vmem:[#allocation8 + $0x168] sm:$0xff]  }
  0x7d   :  { %2229 = vmatprep.subr.bf16.mxu1 %v2541_v18  ;;  %v2559_v53 = vld [vmem:[#allocation8 + $0x150] sm:$0xff]   ;;  %v2564_v58 = vld [vmem:[#allocation8 + $0x178] sm:$0xff]   ;;  %v2565_v59 = vld [vmem:[#allocation9 + $0x40] sm:$0xff]  }
  0x7e   :  { %v2563_v57 = vld [vmem:[#allocation8 + $0x170] sm:$0xff]   ;;  %v2566_v60 = vld [vmem:[#allocation9] sm:$0xff]   ;;  %v2567_v61 = vld [vmem:[#allocation9 + $0x48] sm:$0xff]  }
  0x7f   :  { %2433 = vmatpush3.bf16.msra.mxu0 %v2521_v8  ;;  %v2569_v62 = vld [vmem:[#allocation9 + $0xc0] sm:$0xff]   ;;  %v2568_v63 = vld [vmem:[#allocation9 + $0x8] sm:$0xff]   ;;  %v2571_v1 = vld [vmem:[#allocation9 + $0x50] sm:$0xff]  }
  0x80   :  { %2434 = vmatprep.subr.bf16.mxu0 %v2875_v0  ;;  %2230 = vmatpush3.bf16.msra.mxu1 %v2543_v20  ;;  %v2572_v2 = vld [vmem:[#allocation9 + $0x10] sm:$0xff]   ;;  %v2575_v3 = vld [vmem:[#allocation9 + $0x58] sm:$0xff]   ;;  %v2579_v5 = vld [vmem:[#allocation9 + $0x60] sm:$0xff]  }
  0x81   :  { %2231 = vmatprep.subr.bf16.mxu1 %v2545_v23  ;;  %v2576_v4 = vld [vmem:[#allocation9 + $0x18] sm:$0xff]   ;;  %v2580_v6 = vld [vmem:[#allocation9 + $0x20] sm:$0xff]   ;;  %v2583_v7 = vld [vmem:[#allocation9 + $0x68] sm:$0xff]  }
  0x82   :  { %v2584_v8 = vld [vmem:[#allocation9 + $0x28] sm:$0xff]   ;;  %v2587_v9 = vld [vmem:[#allocation9 + $0x70] sm:$0xff]  }
  0x83   :  { %2435 = vmatpush3.bf16.msra.mxu0 %v2522_v11  ;;  %v2588_v10 = vld [vmem:[#allocation9 + $0x30] sm:$0xff]   ;;  %v2591_v11 = vld [vmem:[#allocation9 + $0x78] sm:$0xff]  }
  0x84   :  { %2436 = vmatprep.subr.bf16.mxu0 %v2875_v0  ;;  %2232 = vmatpush3.bf16.msra.mxu1 %v2547_v25 }
  0x85   :  { %2233 = vmatprep.subr.bf16.mxu1 %v2549_v35  ;;  %v2586_v35 = vld [vmem:[#allocation9 + $0xa0] sm:$0xff]  }
  0x87   :  { %2437 = vmatpush3.bf16.msra.mxu0 %v2523_v14  ;;  %v2050_v14 = vld [vmem:[%s3127_s3 + $0x1] ss:$0 sm:$0xff] }
  0x88   :  { %2438 = vmatprep.subr.bf16.mxu0 %v2875_v0  ;;  %2234 = vmatpush3.bf16.msra.mxu1 %v2551_v37  ;;  %v2590_v37 = vld [vmem:[#allocation9 + $0xa8] sm:$0xff]  }
  0x89   :  { %2235 = vmatprep.subr.bf16.mxu1 %v2553_v39  ;;  %v2593_v39 = vld [vmem:[#allocation9 + $0xf0] sm:$0xff]  }
  0x8b   :  { %2439 = vmatpush3.bf16.msra.mxu0 %v2524_v16 }
  0x8c   :  { %2243 = vmatprep.subr.bf16.mxu0 %v2526_v19  ;;  %2236 = vmatpush3.bf16.msra.mxu1 %v2555_v41  ;;  %v2595_v41 = vld [vmem:[#allocation9 + $0xf8] sm:$0xff]  }
  0x8d   :  { %2444 = vmatprep.subr.bf16.mxu1 %v2875_v0 }
  0x8e   :  { %2441 = vmatmul.mubr.bf16.vlgmr.msra.gmra.mrb[0].mxu0 %v3034_v22 }
  0x8f   :  { %2244 = vmatpush3.bf16.msra.mxu0 %v2528_v21 }
  0x90   :  { %2245 = vmatprep.subr.bf16.mxu0 %v2530_v24 }
  0x93   :  { %2246 = vmatpush3.bf16.msra.mxu0 %v2532_v26  ;;  %v2570_v26 = vld [vmem:[#allocation9 + $0x80] sm:$0xff]  }
  0x94   :  { %2247 = vmatprep.subr.bf16.mxu0 %v2534_v27 }
  0x97   :  { %2248 = vmatpush3.bf16.msra.mxu0 %v2536_v28  ;;  %v2573_v28 = vld [vmem:[#allocation9 + $0xc8] sm:$0xff]  }
  0x98   :  { %2249 = vmatprep.subr.bf16.mxu0 %v2538_v29  ;;  %v2574_v29 = vld [vmem:[#allocation9 + $0x88] sm:$0xff]  }
  0x9b   :  { %2250 = vmatpush3.bf16.msra.mxu0 %v2540_v30  ;;  %v2577_v30 = vld [vmem:[#allocation9 + $0xd0] sm:$0xff]  }
  0x9c   :  { %2251 = vmatprep.subr.bf16.mxu0 %v2542_v31  ;;  %v2578_v31 = vld [vmem:[#allocation9 + $0x90] sm:$0xff]  }
  0x9f   :  { %2252 = vmatpush3.bf16.msra.mxu0 %v2544_v32  ;;  %v2581_v32 = vld [vmem:[#allocation9 + $0xd8] sm:$0xff]  }
  0xa0   :  { %2253 = vmatprep.subr.bf16.mxu0 %v2546_v33  ;;  %v2582_v33 = vld [vmem:[#allocation9 + $0x98] sm:$0xff]  }
  0xa3   :  { %2254 = vmatpush3.bf16.msra.mxu0 %v2548_v34  ;;  %v2585_v34 = vld [vmem:[#allocation9 + $0xe0] sm:$0xff]  }
  0xa4   :  { %2255 = vmatprep.subr.bf16.mxu0 %v2550_v36  ;;  %v2589_v36 = vld [vmem:[#allocation9 + $0xe8] sm:$0xff]  }
  0xa7   :  { %2256 = vmatpush3.bf16.msra.mxu0 %v2552_v38  ;;  %v2592_v38 = vld [vmem:[#allocation9 + $0x38] sm:$0xff]  }
  0xa8   :  { %2257 = vmatprep.subr.bf16.mxu0 %v2554_v40  ;;  %v2594_v40 = vld [vmem:[#allocation9 + $0xb0] sm:$0xff]  }
  0xab   :  { %2258 = vmatpush3.bf16.msra.mxu0 %v2556_v42  ;;  %v2596_v42 = vld [vmem:[#allocation9 + $0xb8] sm:$0xff]  }
  0xac   :  { %2274 = vmatprep.subr.bf16.mxu0 %v2565_v59  ;;  %v2600_v59 = vld [vmem:[#allocation11 + $0x18] sm:$0xff]  }
 0x161   :  { %v227_v44 = vpop.f32.mrb[0].mxu0 }
 0x162   :  { %v228_v45 = vadd.f32 %v2040_v43, %v227_v44  ;;  %v2442_v46 = vpop.f32.mrb[1].mxu0  ;;  %v2068_v43 = vld [vmem:[%s3127_s3 + $0x2] ss:$0 sm:$0xff] }
 0x163   :  { %v230_v47 = vpop.f32.mrb[2].mxu0 }
 0x164   :  { %v233_v48 = vmax.f32 %v228_v45, 0.0  ;;  %v2443_v49 = vpop.f32.mrb[3].mxu0 }
 0x166   :  { %v238_v50 = vpack.c.bf16 %v233_v48, %v233_v48 }
 0x168   :  { %407 = vmatprep.mubr.bf16.mxu1 %v238_v50  ;;  %655 = vmatprep.mubr.bf16.mxu0 %v238_v50 }
 0x169   :  { %408 = vmatmul.mubr.bf16.vlgmr.msra.gmra.mrb[0].mxu1 %v3034_v22  ;;  %656 = vmatmul.mubr.bf16.vlgmr.msra.gmra.mrb[4].mxu0 %v3034_v22 }
 0x16a   :  { %1008 = vmatprep.mubr.bf16.mxu0 %v238_v50  ;;  %2445 = vmatpush3.bf16.msra.mxu1 %v2557_v51 }
 0x16b   :  { %2446 = vmatprep.subr.bf16.mxu1 %v2875_v0  ;;  %2460 = vmatprep.mubr.msk.bf16.mxu1 %vm2876_vm0, %v2875_v0 }
 0x16c   :  { %2275 = vmatpush3.bf16.msra.mxu0 %v2566_v60  ;;  %v2093_v60 = vld [vmem:[%s3129_s5] ss:$0 sm:$0xff] }
 0x16d   :  { %2276 = vmatprep.subr.bf16.mxu0 %v2567_v61  ;;  %v2601_v61 = vld [vmem:[#allocation11 + $0x20] sm:$0xff]  }
 0x16e   :  { %2447 = vmatpush3.bf16.msra.mxu1 %v2558_v52 }
 0x16f   :  { %2448 = vmatprep.subr.bf16.mxu1 %v2875_v0 }
 0x170   :  { %2277 = vmatpush3.bf16.msra.mxu0 %v2568_v63 }
 0x171   :  { %2278 = vmatprep.subr.bf16.mxu0 %v2571_v1 }
 0x172   :  { %2449 = vmatpush3.bf16.msra.mxu1 %v2559_v53 }
 0x173   :  { %2450 = vmatprep.subr.bf16.mxu1 %v2875_v0 }
 0x174   :  { %2279 = vmatpush3.bf16.msra.mxu0 %v2572_v2 }
 0x175   :  { %2280 = vmatprep.subr.bf16.mxu0 %v2575_v3 }
 0x176   :  { %2451 = vmatpush3.bf16.msra.mxu1 %v2560_v54 }
 0x177   :  { %2452 = vmatprep.subr.bf16.mxu1 %v2875_v0 }
 0x178   :  { %2281 = vmatpush3.bf16.msra.mxu0 %v2576_v4  ;;  %v2602_v4 = vld [vmem:[#allocation11 + $0x28] sm:$0xff]  }
 0x179   :  { %2282 = vmatprep.subr.bf16.mxu0 %v2579_v5 }
 0x17a   :  { %2453 = vmatpush3.bf16.msra.mxu1 %v2561_v55 }
 0x17b   :  { %2454 = vmatprep.subr.bf16.mxu1 %v2875_v0 }
 0x17c   :  { %2283 = vmatpush3.bf16.msra.mxu0 %v2580_v6 }
 0x17d   :  { %2284 = vmatprep.subr.bf16.mxu0 %v2583_v7  ;;  %v2603_v7 = vld [vmem:[#allocation11 + $0x30] sm:$0xff]  }
 0x17e   :  { %2455 = vmatpush3.bf16.msra.mxu1 %v2562_v56  ;;  %v2597_v56 = vld [vmem:[#allocation11] sm:$0xff]  }
 0x17f   :  { %2456 = vmatprep.subr.bf16.mxu1 %v2875_v0 }
 0x180   :  { %2285 = vmatpush3.bf16.msra.mxu0 %v2584_v8  ;;  %v2604_v8 = vld [vmem:[#allocation11 + $0x38] sm:$0xff]  }
 0x181   :  { %2286 = vmatprep.subr.bf16.mxu0 %v2587_v9  ;;  %v2605_v9 = vld [vmem:[#allocation11 + $0x100] sm:$0xff]  }
 0x182   :  { %2457 = vmatpush3.bf16.msra.mxu1 %v2563_v57  ;;  %v2598_v57 = vld [vmem:[#allocation11 + $0x8] sm:$0xff]  }
 0x183   :  { %2458 = vmatprep.subr.bf16.mxu1 %v2875_v0 }
 0x184   :  { %2287 = vmatpush3.bf16.msra.mxu0 %v2588_v10  ;;  %v2606_v10 = vld [vmem:[#allocation11 + $0x80] sm:$0xff]  }
 0x185   :  { %2288 = vmatprep.subr.bf16.mxu0 %v2591_v11  ;;  %v2608_v11 = vld [vmem:[#allocation11 + $0x40] sm:$0xff]  }
 0x186   :  { %2459 = vmatpush3.bf16.msra.mxu1 %v2564_v58  ;;  %v2599_v58 = vld [vmem:[#allocation11 + $0x10] sm:$0xff]  }
 0x187   :  { %2296 = vmatprep.subr.bf16.mxu1 %v2569_v62 }
 0x188   :  { %2289 = vmatpush3.bf16.msra.mxu0 %v2592_v38  ;;  %v2613_v38 = vld [vmem:[#allocation11 + $0x110] sm:$0xff]  }
 0x189   :  { %2464 = vmatprep.subr.bf16.mxu0 %v2875_v0 }
 0x18b   :  { %1009 = vmatmul.mubr.bf16.vlgmr.msra.gmra.mrb[8].mxu0 %v3034_v22 }
 0x18c   :  { %2480 = vmatprep.mubr.msk.bf16.mxu0 %vm2876_vm0, %v2875_v0  ;;  %2465 = vmatpush3.bf16.msra.mxu0 %v2597_v56 }
 0x18d   :  { %2466 = vmatprep.subr.bf16.mxu0 %v2875_v0 }
 0x190   :  { %2467 = vmatpush3.bf16.msra.mxu0 %v2598_v57 }
 0x191   :  { %2468 = vmatprep.subr.bf16.mxu0 %v2875_v0 }
 0x194   :  { %2469 = vmatpush3.bf16.msra.mxu0 %v2599_v58 }
 0x195   :  { %2470 = vmatprep.subr.bf16.mxu0 %v2875_v0 }
 0x198   :  { %2471 = vmatpush3.bf16.msra.mxu0 %v2600_v59 }
 0x199   :  { %2472 = vmatprep.subr.bf16.mxu0 %v2875_v0 }
 0x19c   :  { %2473 = vmatpush3.bf16.msra.mxu0 %v2601_v61 }
 0x19d   :  { %2474 = vmatprep.subr.bf16.mxu0 %v2875_v0 }
 0x1a0   :  { %2475 = vmatpush3.bf16.msra.mxu0 %v2602_v4  ;;  %v2654_v4 = vld [vmem:[#allocation11 + $0x148] sm:$0xff]  }
 0x1a1   :  { %2476 = vmatprep.subr.bf16.mxu0 %v2875_v0 }
 0x1a4   :  { %2477 = vmatpush3.bf16.msra.mxu0 %v2603_v7  ;;  %v2655_v7 = vld [vmem:[#allocation11 + $0x150] sm:$0xff]  }
 0x1a5   :  { %2478 = vmatprep.subr.bf16.mxu0 %v2875_v0 }
 0x1a8   :  { %2479 = vmatpush3.bf16.msra.mxu0 %v2604_v8  ;;  %v2644_v8 = vld [vmem:[#allocation12 + $0x18] sm:$0xff]  }
 0x1a9   :  { %2349 = vmatprep.subr.bf16.mxu0 %v2605_v9  ;;  %v2645_v9 = vld [vmem:[#allocation12 + $0x60] sm:$0xff]  }
 0x23c   :  { %v2237_v12 = vpop.f32.mrb[0].mxu1  ;;  %v2259_v13 = vpop.f32.mrb[4].mxu0 }
 0x23d   :  { %v2238_v15 = vpop.f32.mrb[1].mxu1  ;;  %v2260_v16 = vpop.f32.mrb[5].mxu0 }
 0x23e   :  { %v2239_v17 = vadd.f32 %v2238_v15, %v2237_v12  ;;  %v2240_v18 = vpop.f32.mrb[2].mxu1  ;;  %v2261_v19 = vadd.f32 %v2260_v16, %v2259_v13  ;;  %v2262_v20 = vpop.f32.mrb[6].mxu0  ;;  %v2610_v12 = vld [vmem:[#allocation11 + $0x88] sm:$0xff]   ;;  %v2616_v15 = vld [vmem:[#allocation11 + $0x50] sm:$0xff]   ;;  %v2618_v16 = vld [vmem:[#allocation11 + $0x98] sm:$0xff]  }
 0x23f   :  { %v2241_v21 = vpop.f32.mrb[3].mxu1  ;;  %v2263_v23 = vpop.f32.mrb[7].mxu0  ;;  %v2612_v13 = vld [vmem:[#allocation11 + $0x48] sm:$0xff]   ;;  %v2622_v18 = vld [vmem:[#allocation11 + $0xa0] sm:$0xff]  }
 0x240   :  { %v410_v24 = vadd.f32 %v2239_v17, %v2050_v14  ;;  %v658_v44 = vadd.f32 %v2261_v19, %v2068_v43  ;;  %v2614_v14 = vld [vmem:[#allocation11 + $0x90] sm:$0xff]   ;;  %v2620_v17 = vld [vmem:[#allocation11 + $0x58] sm:$0xff]   ;;  %v2624_v19 = vld [vmem:[#allocation11 + $0x60] sm:$0xff]   ;;  %v1057_v23 = vlaneseq }
 0x241   :  { %v2626_v20 = vld [vmem:[#allocation11 + $0xa8] sm:$0xff]   ;;  %v2623_v43 = vld [vmem:[#allocation11 + $0xe0] sm:$0xff]  }
 0x242   :  { %v415_v25 = vmax.f32 %v410_v24, 0.0  ;;  %v2628_v21 = vld [vmem:[#allocation11 + $0x68] sm:$0xff]   ;;  %v1058_v24 = vand.u32 127, %v1057_v23  ;;  %v2661_v23 = vld [vmem:[#allocation12 + $0xc0] sm:$0xff]  }
 0x244   :  { %v422_v27 = vpack.c.bf16 %v415_v25, %v415_v25  ;;  %vm1059_vm1 = vcmp.lt.s32.totalorder %v1058_v24, 2 }
 0x246   :  { %2461 = vmatmul.mubr.bf16.vlgmr.msra.gmra.mrb[4].mxu1 %v422_v27 }
 0x247   :  { %2297 = vmatpush3.bf16.msra.mxu1 %v2570_v26 }
 0x248   :  { %2298 = vmatprep.subr.bf16.mxu1 %v2573_v28 }
 0x24b   :  { %2299 = vmatpush3.bf16.msra.mxu1 %v2574_v29  ;;  %v1064_v29 = vld [vmem:[#allocation6] sm:$0xff] }
 0x24c   :  { %2300 = vmatprep.subr.bf16.mxu1 %v2577_v30 }
 0x24f   :  { %2301 = vmatpush3.bf16.msra.mxu1 %v2578_v31 }
 0x250   :  { %2302 = vmatprep.subr.bf16.mxu1 %v2581_v32 }
 0x253   :  { %2303 = vmatpush3.bf16.msra.mxu1 %v2582_v33 }
 0x254   :  { %2304 = vmatprep.subr.bf16.mxu1 %v2585_v34  ;;  %v2607_v34 = vld [vmem:[#allocation11 + $0xc0] sm:$0xff]  }
 0x257   :  { %2305 = vmatpush3.bf16.msra.mxu1 %v2586_v35 }
 0x258   :  { %2306 = vmatprep.subr.bf16.mxu1 %v2589_v36  ;;  %v2609_v36 = vld [vmem:[#allocation11 + $0x108] sm:$0xff]  }
 0x25b   :  { %2307 = vmatpush3.bf16.msra.mxu1 %v2590_v37  ;;  %v2611_v37 = vld [vmem:[#allocation11 + $0xc8] sm:$0xff]  }
 0x25c   :  { %2308 = vmatprep.subr.bf16.mxu1 %v2593_v39  ;;  %v2615_v39 = vld [vmem:[#allocation11 + $0xd0] sm:$0xff]  }
 0x25e   :  { %v2290_v22 = vpop.f32.mrb[8].mxu0 }
 0x25f   :  { %2309 = vmatpush3.bf16.msra.mxu1 %v2594_v40  ;;  %v2291_v52 = vpop.f32.mrb[9].mxu0  ;;  %v2617_v40 = vld [vmem:[#allocation11 + $0x118] sm:$0xff]  }
 0x260   :  { %2310 = vmatprep.subr.bf16.mxu1 %v2595_v41  ;;  %v2292_v53 = vadd.f32 %v2291_v52, %v2290_v22  ;;  %v2293_v54 = vpop.f32.mrb[10].mxu0  ;;  %v2619_v41 = vld [vmem:[#allocation11 + $0xd8] sm:$0xff]  }
 0x261   :  { %v2294_v55 = vpop.f32.mrb[11].mxu0  ;;  %v2635_v22 = vld [vmem:[#allocation11 + $0xf8] sm:$0xff]   ;;  %v2126_v54 = vld [vmem:[%s3131_s7] ss:$0 sm:$0xff] }
 0x262   :  { %v1011_v62 = vadd.f32 %v2292_v53, %v2093_v60  ;;  %v2636_v52 = vld [vmem:[#allocation11 + $0x78] sm:$0xff]   ;;  %v2637_v53 = vld [vmem:[#allocation12 + $0x40] sm:$0xff]  }
 0x263   :  { %2311 = vmatpush3.bf16.msra.mxu1 %v2596_v42  ;;  %v2621_v42 = vld [vmem:[#allocation11 + $0x120] sm:$0xff]  }
 0x264   :  { %2327 = vmatprep.subr.bf16.mxu1 %v2606_v10  ;;  %v2656_v10 = vld [vmem:[#allocation11 + $0x158] sm:$0xff]  }
 0x319   :  { %v697_v45 = vpop.f32.mrb[4].mxu1 }
 0x31a   :  { %v698_v46 = vadd.f32 %v697_v45, %v658_v44  ;;  %v2462_v47 = vpop.f32.mrb[5].mxu1  ;;  %v2625_v44 = vld [vmem:[#allocation11 + $0x128] sm:$0xff]  }
 0x31b   :  { %v700_v48 = vpop.f32.mrb[6].mxu1  ;;  %v2627_v45 = vld [vmem:[#allocation11 + $0xe8] sm:$0xff]   ;;  %v2630_v47 = vld [vmem:[#allocation11 + $0xb0] sm:$0xff]  }
 0x31c   :  { %v703_v49 = vmax.f32 %v698_v46, 0.0  ;;  %v2463_v50 = vpop.f32.mrb[7].mxu1  ;;  %v2629_v46 = vld [vmem:[#allocation11 + $0x130] sm:$0xff]  }
 0x31d   :  { %v2631_v48 = vld [vmem:[#allocation11 + $0xf0] sm:$0xff]   ;;  %v2633_v50 = vld [vmem:[#allocation11 + $0x138] sm:$0xff]  }
 0x31e   :  { %v712_v51 = vpack.c.bf16 %v703_v49, %v703_v49  ;;  %v2632_v49 = vld [vmem:[#allocation11 + $0x70] sm:$0xff]  }
 0x320   :  { %1048 = vmatprep.mubr.bf16.mxu1 %v712_v51  ;;  %v2634_v51 = vld [vmem:[#allocation11 + $0xb8] sm:$0xff]  }
 0x321   :  { %1049 = vmatmul.mubr.bf16.vlgmr.msra.gmra.mrb[8].mxu1 %v422_v27 }
 0x322   :  { %2328 = vmatpush3.bf16.msra.mxu1 %v2608_v11  ;;  %v2646_v11 = vld [vmem:[#allocation12 + $0x20] sm:$0xff]  }
 0x323   :  { %2329 = vmatprep.subr.bf16.mxu1 %v2610_v12  ;;  %v2647_v12 = vld [vmem:[#allocation12 + $0x68] sm:$0xff]  }
 0x326   :  { %2330 = vmatpush3.bf16.msra.mxu1 %v2612_v13  ;;  %v2657_v13 = vld [vmem:[#allocation11 + $0x160] sm:$0xff]  }
 0x327   :  { %2331 = vmatprep.subr.bf16.mxu1 %v2614_v14  ;;  %v2648_v14 = vld [vmem:[#allocation12 + $0x28] sm:$0xff]  }
 0x32a   :  { %2332 = vmatpush3.bf16.msra.mxu1 %v2616_v15  ;;  %v2649_v15 = vld [vmem:[#allocation12 + $0x70] sm:$0xff]  }
 0x32b   :  { %2333 = vmatprep.subr.bf16.mxu1 %v2618_v16  ;;  %v2658_v16 = vld [vmem:[#allocation11 + $0x168] sm:$0xff]  }
 0x32e   :  { %2334 = vmatpush3.bf16.msra.mxu1 %v2620_v17  ;;  %v2650_v17 = vld [vmem:[#allocation12 + $0x30] sm:$0xff]  }
 0x32f   :  { %2335 = vmatprep.subr.bf16.mxu1 %v2622_v18  ;;  %v2651_v18 = vld [vmem:[#allocation12 + $0x78] sm:$0xff]  }
 0x332   :  { %2336 = vmatpush3.bf16.msra.mxu1 %v2624_v19  ;;  %v2652_v19 = vld [vmem:[#allocation12 + $0x38] sm:$0xff]  }
 0x333   :  { %2337 = vmatprep.subr.bf16.mxu1 %v2626_v20  ;;  %v2659_v20 = vld [vmem:[#allocation11 + $0x170] sm:$0xff]  }
 0x336   :  { %2338 = vmatpush3.bf16.msra.mxu1 %v2628_v21  ;;  %v2660_v21 = vld [vmem:[#allocation11 + $0x178] sm:$0xff]  }
 0x337   :  { %2339 = vmatprep.subr.bf16.mxu1 %v2630_v47  ;;  %v2672_v47 = vld [vmem:[#allocation12 + $0xa8] sm:$0xff]  }
 0x33a   :  { %2340 = vmatpush3.bf16.msra.mxu1 %v2632_v49 }
 0x33b   :  { %2341 = vmatprep.subr.bf16.mxu1 %v2634_v51 }
 0x33e   :  { %2342 = vmatpush3.bf16.msra.mxu1 %v2636_v52  ;;  %v2673_v52 = vld [vmem:[#allocation12 + $0xf0] sm:$0xff]  }
 0x33f   :  { %2484 = vmatprep.subr.bf16.mxu1 %v2875_v0 }
 0x3f4   :  { %v2312_v63 = vpop.f32.mrb[8].mxu1 }
 0x3f5   :  { %v2313_v1 = vpop.f32.mrb[9].mxu1 }
 0x3f6   :  { %v2314_v2 = vadd.f32 %v2313_v1, %v2312_v63  ;;  %v2315_v3 = vpop.f32.mrb[10].mxu1  ;;  %v2639_v63 = vld [vmem:[#allocation12 + $0x48] sm:$0xff]   ;;  %v2653_v1 = vld [vmem:[#allocation11 + $0x140] sm:$0xff]  }
 0x3f7   :  { %v2316_v5 = vpop.f32.mrb[11].mxu1  ;;  %v2641_v3 = vld [vmem:[#allocation12 + $0x50] sm:$0xff]  }
 0x3f8   :  { %v1051_v6 = vadd.f32 %v2314_v2, %v1011_v62  ;;  %v2638_v62 = vld [vmem:[#allocation12] sm:$0xff]   ;;  %v2640_v2 = vld [vmem:[#allocation12 + $0x8] sm:$0xff]   ;;  %v2642_v5 = vld [vmem:[#allocation12 + $0x10] sm:$0xff]  }
 0x3fa   :  { %1056 = vst [vmem:[#allocation14] sm:$0xff] %v1051_v6  ;;  %1061 = vrot.lane.b32.xlu0 %v1051_v6, %s2877_s4  ;;  %v1060_v32 = vsel %vm1059_vm1, %v1051_v6, 0.0  ;;  %v2643_v6 = vld [vmem:[#allocation12 + $0x58] sm:$0xff]  }
 0x46c   :  { %v1062_v25 = vpop.permute.xlu0 %1061 }
 0x46d   :  { %v1063_v26 = vsel %vm1059_vm1, %v1062_v25, 0.0 }
 0x46e   :  { %v1065_v27 = vmul.f32 0.5, %v1063_v26  ;;  %v2136_v26 = vld [vmem:[%s3131_s7 + $0x1] ss:$0 sm:$0xff] }
 0x470   :  { %v1066_v28 = vmul.f32 1.442695, %v1065_v27 }
 0x472   :  { %2677 = vpow2.f32 %v1066_v28 }
 0x47c   :  { %v2678_v30 = vpop.eup %2677 }
 0x47d   :  { %v1068_v31 = vmul.f32 %v2678_v30, %v1064_v29 }
 0x47f   :  { %v1069_v33 = vadd.f32 %v1068_v31, %v1060_v32 }
 0x481   :  { %v3072_v35 = vpack.c.bf16 %v1069_v33, %v1069_v33 }
 0x483   :  { %2481 = vmatmul.mubr.bf16.vlgmr.msra.gmra.mrb[12].mxu0 %v3072_v35 }
 0x484   :  { %2350 = vmatpush3.bf16.msra.mxu0 %v2607_v34 }
 0x485   :  { %2351 = vmatprep.subr.bf16.mxu0 %v2609_v36  ;;  %v2662_v36 = vld [vmem:[#allocation12 + $0x80] sm:$0xff]  }
 0x488   :  { %2352 = vmatpush3.bf16.msra.mxu0 %v2611_v37 }
 0x489   :  { %2353 = vmatprep.subr.bf16.mxu0 %v2613_v38  ;;  %v2663_v38 = vld [vmem:[#allocation12 + $0xc8] sm:$0xff]  }
 0x48c   :  { %2354 = vmatpush3.bf16.msra.mxu0 %v2615_v39  ;;  %v2664_v39 = vld [vmem:[#allocation12 + $0x88] sm:$0xff]  }
 0x48d   :  { %2355 = vmatprep.subr.bf16.mxu0 %v2617_v40  ;;  %v2665_v40 = vld [vmem:[#allocation12 + $0xd0] sm:$0xff]  }
 0x490   :  { %2356 = vmatpush3.bf16.msra.mxu0 %v2619_v41  ;;  %v2666_v41 = vld [vmem:[#allocation12 + $0x90] sm:$0xff]  }
 0x491   :  { %2357 = vmatprep.subr.bf16.mxu0 %v2621_v42  ;;  %v2667_v42 = vld [vmem:[#allocation12 + $0xd8] sm:$0xff]  }
 0x494   :  { %2358 = vmatpush3.bf16.msra.mxu0 %v2623_v43  ;;  %v2668_v43 = vld [vmem:[#allocation12 + $0x98] sm:$0xff]  }
 0x495   :  { %2359 = vmatprep.subr.bf16.mxu0 %v2625_v44  ;;  %v2669_v44 = vld [vmem:[#allocation12 + $0xe0] sm:$0xff]  }
 0x498   :  { %2360 = vmatpush3.bf16.msra.mxu0 %v2627_v45  ;;  %v2670_v45 = vld [vmem:[#allocation12 + $0xa0] sm:$0xff]  }
 0x499   :  { %2361 = vmatprep.subr.bf16.mxu0 %v2629_v46  ;;  %v2671_v46 = vld [vmem:[#allocation12 + $0xe8] sm:$0xff]  }
 0x49c   :  { %2362 = vmatpush3.bf16.msra.mxu0 %v2631_v48 }
 0x49d   :  { %2363 = vmatprep.subr.bf16.mxu0 %v2633_v50 }
 0x4a0   :  { %2364 = vmatpush3.bf16.msra.mxu0 %v2635_v22 }
 0x4a1   :  { %2380 = vmatprep.subr.bf16.mxu0 %v2637_v53  ;;  %v2674_v53 = vld [vmem:[#allocation12 + $0xb0] sm:$0xff]  }
 0x556   :  { %v1178_v55 = vpop.f32.mrb[12].mxu0 }
 0x557   :  { %v1179_v56 = vadd.f32 %v2126_v54, %v1178_v55  ;;  %v2482_v57 = vpop.f32.mrb[13].mxu0  ;;  %v2675_v54 = vld [vmem:[#allocation12 + $0xf8] sm:$0xff]  }
 0x558   :  { %v1181_v58 = vpop.f32.mrb[14].mxu0  ;;  %v2676_v55 = vld [vmem:[#allocation12 + $0xb8] sm:$0xff]  }
 0x559   :  { %v1184_v59 = vmax.f32 %v1179_v56, 0.0  ;;  %v2483_v60 = vpop.f32.mrb[15].mxu0  ;;  %v2154_v56 = vld [vmem:[%s3131_s7 + $0x2] ss:$0 sm:$0xff] }
 0x55b   :  { %v1189_v61 = vpack.c.bf16 %v1184_v59, %v1184_v59 }
 0x55d   :  { %1358 = vmatprep.mubr.bf16.mxu1 %v1189_v61  ;;  %1606 = vmatprep.mubr.bf16.mxu0 %v1189_v61 }
 0x55e   :  { %1359 = vmatmul.mubr.bf16.vlgmr.msra.gmra.mrb[12].mxu1 %v3072_v35  ;;  %1607 = vmatmul.mubr.bf16.vlgmr.msra.gmra.mrb[16].mxu0 %v3072_v35 }
 0x55f   :  { %2381 = vmatpush3.bf16.msra.mxu0 %v2638_v62  ;;  %1959 = vmatprep.mubr.bf16.mxu0 %v1189_v61 }
 0x560   :  { %2382 = vmatprep.subr.bf16.mxu0 %v2639_v63  ;;  %2485 = vmatpush3.bf16.msra.mxu1 %v2653_v1 }
 0x561   :  { %2486 = vmatprep.subr.bf16.mxu1 %v2875_v0  ;;  %2500 = vmatprep.mubr.msk.bf16.mxu1 %vm2876_vm0, %v2875_v0 }
 0x563   :  { %2383 = vmatpush3.bf16.msra.mxu0 %v2640_v2 }
 0x564   :  { %2384 = vmatprep.subr.bf16.mxu0 %v2641_v3  ;;  %2487 = vmatpush3.bf16.msra.mxu1 %v2654_v4 }
 0x565   :  { %2488 = vmatprep.subr.bf16.mxu1 %v2875_v0 }
 0x567   :  { %2385 = vmatpush3.bf16.msra.mxu0 %v2642_v5 }
 0x568   :  { %2386 = vmatprep.subr.bf16.mxu0 %v2643_v6  ;;  %2489 = vmatpush3.bf16.msra.mxu1 %v2655_v7 }
 0x569   :  { %2490 = vmatprep.subr.bf16.mxu1 %v2875_v0 }
 0x56b   :  { %2387 = vmatpush3.bf16.msra.mxu0 %v2644_v8 }
 0x56c   :  { %2388 = vmatprep.subr.bf16.mxu0 %v2645_v9  ;;  %2491 = vmatpush3.bf16.msra.mxu1 %v2656_v10 }
 0x56d   :  { %2492 = vmatprep.subr.bf16.mxu1 %v2875_v0 }
 0x56f   :  { %2389 = vmatpush3.bf16.msra.mxu0 %v2646_v11 }
 0x570   :  { %2390 = vmatprep.subr.bf16.mxu0 %v2647_v12  ;;  %2493 = vmatpush3.bf16.msra.mxu1 %v2657_v13 }
 0x571   :  { %2494 = vmatprep.subr.bf16.mxu1 %v2875_v0 }
 0x573   :  { %2391 = vmatpush3.bf16.msra.mxu0 %v2648_v14 }
 0x574   :  { %2392 = vmatprep.subr.bf16.mxu0 %v2649_v15  ;;  %2495 = vmatpush3.bf16.msra.mxu1 %v2658_v16 }
 0x575   :  { %2496 = vmatprep.subr.bf16.mxu1 %v2875_v0 }
 0x577   :  { %2393 = vmatpush3.bf16.msra.mxu0 %v2650_v17 }
 0x578   :  { %2394 = vmatprep.subr.bf16.mxu0 %v2651_v18  ;;  %2497 = vmatpush3.bf16.msra.mxu1 %v2659_v20 }
 0x579   :  { %2498 = vmatprep.subr.bf16.mxu1 %v2875_v0 }
 0x57b   :  { %2395 = vmatpush3.bf16.msra.mxu0 %v2652_v19 }
 0x57c   :  { %2499 = vmatpush3.bf16.msra.mxu1 %v2660_v21 }
 0x57d   :  { %2402 = vmatprep.subr.bf16.mxu1 %v2661_v23 }
 0x57e   :  { %1960 = vmatmul.mubr.bf16.vlgmr.msra.gmra.mrb[20].mxu0 %v3072_v35 }
 0x631   :  { %v2343_v24 = vpop.f32.mrb[12].mxu1  ;;  %v2365_v25 = vpop.f32.mrb[16].mxu0 }
 0x632   :  { %v2344_v27 = vpop.f32.mrb[13].mxu1  ;;  %v2366_v28 = vpop.f32.mrb[17].mxu0 }
 0x633   :  { %v2345_v29 = vadd.f32 %v2344_v27, %v2343_v24  ;;  %v2367_v30 = vadd.f32 %v2366_v28, %v2365_v25  ;;  %v2346_v31 = vpop.f32.mrb[14].mxu1  ;;  %v2368_v32 = vpop.f32.mrb[18].mxu0 }
 0x634   :  { %v2347_v33 = vpop.f32.mrb[15].mxu1  ;;  %v2369_v34 = vpop.f32.mrb[19].mxu0 }
 0x635   :  { %v1361_v35 = vadd.f32 %v2345_v29, %v2136_v26  ;;  %v1609_v57 = vadd.f32 %v2367_v30, %v2154_v56 }
 0x637   :  { %v1366_v0 = vmax.f32 %v1361_v35, 0.0 }
 0x639   :  { %v1373_v37 = vpack.c.bf16 %v1366_v0, %v1366_v0 }
 0x63b   :  { %2501 = vmatmul.mubr.bf16.vlgmr.msra.gmra.mrb[16].mxu1 %v1373_v37 }
 0x63c   :  { %2403 = vmatpush3.bf16.msra.mxu1 %v2662_v36 }
 0x63d   :  { %2404 = vmatprep.subr.bf16.mxu1 %v2663_v38 }
 0x640   :  { %2405 = vmatpush3.bf16.msra.mxu1 %v2664_v39 }
 0x641   :  { %2406 = vmatprep.subr.bf16.mxu1 %v2665_v40 }
 0x644   :  { %2407 = vmatpush3.bf16.msra.mxu1 %v2666_v41 }
 0x645   :  { %2408 = vmatprep.subr.bf16.mxu1 %v2667_v42 }
 0x648   :  { %2409 = vmatpush3.bf16.msra.mxu1 %v2668_v43 }
 0x649   :  { %2410 = vmatprep.subr.bf16.mxu1 %v2669_v44 }
 0x64c   :  { %2411 = vmatpush3.bf16.msra.mxu1 %v2670_v45 }
 0x64d   :  { %2412 = vmatprep.subr.bf16.mxu1 %v2671_v46 }
 0x650   :  { %2413 = vmatpush3.bf16.msra.mxu1 %v2672_v47 }
 0x651   :  { %v2396_v48 = vpop.f32.mrb[20].mxu0  ;;  %2414 = vmatprep.subr.bf16.mxu1 %v2673_v52 }
 0x652   :  { %v2397_v49 = vpop.f32.mrb[21].mxu0 }
 0x653   :  { %v2398_v50 = vadd.f32 %v2397_v49, %v2396_v48  ;;  %v2399_v51 = vpop.f32.mrb[22].mxu0 }
 0x654   :  { %v2400_v22 = vpop.f32.mrb[23].mxu0  ;;  %2415 = vmatpush3.bf16.msra.mxu1 %v2674_v53 }
 0x655   :  { %2416 = vmatprep.subr.bf16.mxu1 %v2675_v54 }
 0x658   :  { %2417 = vmatpush3.bf16.msra.mxu1 %v2676_v55 }
 0x70e   :  { %v1648_v58 = vpop.f32.mrb[16].mxu1 }
 0x70f   :  { %v1649_v59 = vadd.f32 %v1648_v58, %v1609_v57  ;;  %v2502_v60 = vpop.f32.mrb[17].mxu1 }
 0x710   :  { %v1651_v61 = vpop.f32.mrb[18].mxu1 }
 0x711   :  { %v1654_v62 = vmax.f32 %v1649_v59, 0.0  ;;  %v2503_v63 = vpop.f32.mrb[19].mxu1 }
 0x713   :  { %v1663_v1 = vpack.c.bf16 %v1654_v62, %v1654_v62 }
 0x715   :  { %1999 = vmatprep.mubr.bf16.mxu1 %v1663_v1 }
 0x716   :  { %2000 = vmatmul.mubr.bf16.vlgmr.msra.gmra.mrb[20].mxu1 %v1373_v37 }
 0x717   :  { %2822 = shalt.err (!%p2819_p10)
}
 0x718   :  { %s2823_s25 = scalar_lea.hbm %s3134_s10, 128 }
 0x719   :  { %p2824_p11 = scmp.ne.s32.totalorder %s3134_s10, %s2823_s25  ;;  %p2827_p12 = scmp.lt.u32.totalorder %s2823_s25, %s3134_s10 }
 0x71b   :  { %p2829_p13 = pnand %p2827_p12, %p2824_p11 }
 0x71d   :  { %2832 = shalt.err (!%p2829_p13)
}
 0x71e   :  { %2017 = dma.vmem_to_hbm [thread:$0]  %s2015_s1, 128, %s3134_s10, [#allocation5]   ;;  %v2179_v2 = vld [vmem:[%s3133_s9] ss:$0 sm:$0xff] }
 0x71f   :  { %s2879_s18 = smov [#allocation15]   ;;  %v1962_v5 = vadd.f32 %v2398_v50, %v2179_v2 }
 0x720   :  { %s2024_s22 = sshll.u32 %s2879_s18, 4  ;;  %s2025_s22 = int_to_ptr.vmem [resolvable:$true] %s2024_s22 }
 0x721   :  { %s2833_s29 = scalar_lea.vmem %s2025_s22, 128  ;;  %p2838_p1 = scmp.lt.s32.totalorder %s2025_s22, %s2025_s22 }
 0x722   :  { %p2834_p0 = scmp.ne.s32.totalorder %s2025_s22, %s2833_s29  ;;  %p2839_p2 = scmp.lt.s32.totalorder %s2833_s29, %s2833_s29 }
 0x724   :  { %p2840_p3 = por %p2839_p2, %p2838_p1 }
 0x726   :  { %p2841_p4 = pnand %p2840_p3, %p2834_p0 }
 0x7e9   :  { %v2418_v3 = vpop.f32.mrb[20].mxu1 }
 0x7ea   :  { %v2419_v4 = vpop.f32.mrb[21].mxu1 }
 0x7eb   :  { %v2420_v6 = vadd.f32 %v2419_v4, %v2418_v3  ;;  %v2421_v7 = vpop.f32.mrb[22].mxu1 }
 0x7ec   :  { %v2422_v8 = vpop.f32.mrb[23].mxu1 }
 0x7ed   :  { %v2002_v9 = vadd.f32 %v2420_v6, %v1962_v5 }
 0x7ef   :  { %2007 = vst [vmem:[#allocation15] sm:$0xff] %v2002_v9 }
 0x7f0   :  { %2844 = shalt.err (!%p2841_p4)
}
 0x7f1   :  { %s2845_s12 = scalar_lea.hbm %s3135_s11, 128 }
 0x7f2   :  { %p2846_p5 = scmp.ne.s32.totalorder %s3135_s11, %s2845_s12  ;;  %p2849_p6 = scmp.lt.u32.totalorder %s2845_s12, %s3135_s11 }
 0x7f4   :  { %p2851_p7 = pnand %p2849_p6, %p2846_p5 }
 0x7f6   :  { %2854 = shalt.err (!%p2851_p7)
}
 0x7f7   :  { %2027 = dma.vmem_to_hbm [thread:$0]  %s2025_s22, 128, %s3135_s11, [#allocation16]  }
 0x7f8   :  { %2863 = dma.done.wait [#allocation5], 128  }
 0x7f9   :  { %2864 = vsyncadd [#allocation5], 4294967168 }
 0x7fa   :  { %2865 = dma.done.wait [#allocation16], 128  }
 0x7fb   :  { %2866 = vsyncadd [#allocation16], 4294967168 }
 0x7fc   :  { %2034 = vsyncpa [#allocation4], 1 }
 0x7fd   :  { %2035 = vsyncpa [#allocation7], 1 }
 0x7fe   :  { %2036 = vsyncpa [#allocation10], 1 }
 0x7ff   :  { %2037 = vsyncpa [#allocation13], 1 }
 0x800   :  { %2038 = vsyncpa [#allocation5], 1 }
 0x801   :  { %2039 = vsyncpa [#allocation16], 1 }

</bundles_post_ra>
